<compile_context>
chip_gen: v5e
topology: v5e:2x2
jax: 0.10.0
libtpu: 0.0.40
codegen_flags: <defaults>
</compile_context>

<pallas_src>
import math

import jax
import jax.numpy as jnp
from jax import lax
from jax.experimental import pallas as pl
from jax.experimental.pallas import tpu as pltpu


def _round_up(x, m):
    return ((x + m - 1) // m) * m


def _tile_for(dim, max_tile=512):
    """Pick a lane/MXU friendly tile (multiple of 128) and the padded dim."""
    padded = _round_up(dim, 128)
    t = 128
    while t * 2 <= max_tile and padded % (t * 2) == 0:
        t *= 2
    return t, padded


_F32 = 4
_FUSED_VMEM_BUDGET = 26 * 1024 * 1024  # stay under a 32 MiB scoped limit


# ---------------------------------------------------------------------------
# Fused kernel: support accumulation over F_in, then adj @ support at finalize
# Grid: (j = F_out tiles [parallel], k = F_in tiles [arbitrary, reduction])
# ---------------------------------------------------------------------------
def _gcn_fused_kernel(x_ref, w_ref, adj_ref, o_ref, supp_ref):
    @pl.when(pl.program_id(1) == 0)
    def _init():
        supp_ref[...] = jnp.zeros_like(supp_ref)

    supp_ref[...] += jnp.dot(
        x_ref[...], w_ref[...],
        preferred_element_type=jnp.float32,
        precision=lax.Precision.HIGHEST,
    )

    @pl.when(pl.program_id(1) == pl.num_programs(1) - 1)
    def _finalize():
        o_ref[...] = jnp.dot(
            adj_ref[...], supp_ref[...],
            preferred_element_type=jnp.float32,
            precision=lax.Precision.HIGHEST,
        ).astype(o_ref.dtype)


def _gcn_fused_bias_kernel(x_ref, w_ref, adj_ref, bias_ref, o_ref, supp_ref):
    @pl.when(pl.program_id(1) == 0)
    def _init():
        supp_ref[...] = jnp.zeros_like(supp_ref)

    supp_ref[...] += jnp.dot(
        x_ref[...], w_ref[...],
        preferred_element_type=jnp.float32,
        precision=lax.Precision.HIGHEST,
    )

    @pl.when(pl.program_id(1) == pl.num_programs(1) - 1)
    def _finalize():
        out = jnp.dot(
            adj_ref[...], supp_ref[...],
            preferred_element_type=jnp.float32,
            precision=lax.Precision.HIGHEST,
        )
        # Bias added exactly once, in the finalize branch (broadcast [1, tn]).
        o_ref[...] = (out + bias_ref[...].astype(jnp.float32)).astype(o_ref.dtype)


def _fused_vmem_bytes(n, f_in, f_out):
    """Rough VMEM footprint of the fused kernel (double-buffered inputs)."""
    n_pad = _round_up(n, 128)
    tk, _ = _tile_for(f_in)
    tn, _ = _tile_for(f_out)
    return _F32 * (
        2 * n_pad * n_pad      # adj (double buffered, constant block index)
        + 2 * n_pad * tk       # x tile
        + 2 * tk * tn          # w tile
        + 2 * n_pad * tn       # out tile
        + n_pad * tn           # support scratch
        + 2 * tn               # bias tile
    )


def _gcn_fused(x, adj, weight, bias, out_dtype):
    n, f_in = x.shape
    f_out = weight.shape[1]

    n_pad = _round_up(n, 128)
    tk, kp = _tile_for(f_in)
    tn, fp = _tile_for(f_out)

    x_p = x if (n_pad == n and kp == f_in) else jnp.pad(
        x, ((0, n_pad - n), (0, kp - f_in)))
    w_p = weight if (kp == f_in and fp == f_out) else jnp.pad(
        weight, ((0, kp - f_in), (0, fp - f_out)))
    adj_p = adj if n_pad == n else jnp.pad(
        adj, ((0, n_pad - n), (0, n_pad - n)))

    grid = (fp // tn, kp // tk)

    in_specs = [
        pl.BlockSpec((n_pad, tk), lambda j, k: (0, k)),        # x
        pl.BlockSpec((tk, tn), lambda j, k: (k, j)),            # weight
        pl.BlockSpec((n_pad, n_pad), lambda j, k: (0, 0)),       # adj (resident)
    ]
    args = [x_p, w_p, adj_p]
    kernel = _gcn_fused_kernel
    if bias is not None:
        bias2d = jnp.reshape(bias, (1, f_out)).astype(jnp.float32)
        bias_p = bias2d if fp == f_out else jnp.pad(bias2d, ((0, 0), (0, fp - f_out)))
        in_specs.append(pl.BlockSpec((1, tn), lambda j, k: (0, j)))
        args.append(bias_p)
        kernel = _gcn_fused_bias_kernel

    cost = pl.CostEstimate(
        flops=2 * n_pad * kp * fp + 2 * n_pad * n_pad * fp,
        transcendentals=0,
        bytes_accessed=_F32 * (x_p.size + w_p.size + adj_p.size + n_pad * fp),
    )

    out_p = pl.pallas_call(
        kernel,
        out_shape=jax.ShapeDtypeStruct((n_pad, fp), out_dtype),
        grid_spec=pltpu.PrefetchScalarGridSpec(
            num_scalar_prefetch=0,
            grid=grid,
            in_specs=in_specs,
            out_specs=pl.BlockSpec((n_pad, tn), lambda j, k: (0, j)),
            scratch_shapes=[pltpu.VMEM((n_pad, tn), jnp.float32)],
        ),
        compiler_params=pltpu.CompilerParams(
            dimension_semantics=("parallel", "arbitrary"),
            vmem_limit_bytes=32 * 1024 * 1024,
        ),
        cost_estimate=cost,
    )(*args)

    if n_pad != n or fp != f_out:
        out_p = out_p[:n, :f_out]
    return out_p


# ---------------------------------------------------------------------------
# Fallback (large N): generic tiled matmul with K-reduction accumulator
# ---------------------------------------------------------------------------
def _mm_kernel(a_ref, b_ref, o_ref, acc_ref):
    @pl.when(pl.program_id(2) == 0)
    def _init():
        acc_ref[...] = jnp.zeros_like(acc_ref)

    acc_ref[...] += jnp.dot(
        a_ref[...], b_ref[...],
        preferred_element_type=jnp.float32,
        precision=lax.Precision.HIGHEST,
    )

    @pl.when(pl.program_id(2) == pl.num_programs(2) - 1)
    def _finalize():
        o_ref[...] = acc_ref[...].astype(o_ref.dtype)


def _mm_bias_kernel(a_ref, b_ref, bias_ref, o_ref, acc_ref):
    @pl.when(pl.program_id(2) == 0)
    def _init():
        acc_ref[...] = jnp.zeros_like(acc_ref)

    acc_ref[...] += jnp.dot(
        a_ref[...], b_ref[...],
        preferred_element_type=jnp.float32,
        precision=lax.Precision.HIGHEST,
    )

    @pl.when(pl.program_id(2) == pl.num_programs(2) - 1)
    def _finalize():
        o_ref[...] = (acc_ref[...] + bias_ref[...].astype(jnp.float32)).astype(o_ref.dtype)


def _tiled_matmul(a, b, bias=None, out_dtype=None):
    m, k = a.shape
    k2, n = b.shape
    assert k == k2, f"inner dims mismatch: {a.shape} @ {b.shape}"
    out_dtype = out_dtype or jnp.promote_types(a.dtype, b.dtype)

    tm, mp = _tile_for(m)
    tk, kp = _tile_for(k)
    tn, np_ = _tile_for(n)

    a_p = a if (mp == m and kp == k) else jnp.pad(a, ((0, mp - m), (0, kp - k)))
    b_p = b if (kp == k and np_ == n) else jnp.pad(b, ((0, kp - k), (0, np_ - n)))

    grid = (mp // tm, np_ // tn, kp // tk)

    in_specs = [
        pl.BlockSpec((tm, tk), lambda i, j, kk: (i, kk)),
        pl.BlockSpec((tk, tn), lambda i, j, kk: (kk, j)),
    ]
    args = [a_p, b_p]
    kernel = _mm_kernel
    if bias is not None:
        bias2d = jnp.reshape(bias, (1, n)).astype(jnp.float32)
        bias_p = bias2d if np_ == n else jnp.pad(bias2d, ((0, 0), (0, np_ - n)))
        in_specs.append(pl.BlockSpec((1, tn), lambda i, j, kk: (0, j)))
        args.append(bias_p)
        kernel = _mm_bias_kernel

    itemsize = jnp.dtype(out_dtype).itemsize
    cost = pl.CostEstimate(
        flops=2 * mp * np_ * kp,
        transcendentals=0,
        bytes_accessed=(a_p.size * a_p.dtype.itemsize
                        + b_p.size * b_p.dtype.itemsize
                        + mp * np_ * itemsize),
    )

    out_p = pl.pallas_call(
        kernel,
        out_shape=jax.ShapeDtypeStruct((mp, np_), out_dtype),
        grid_spec=pltpu.PrefetchScalarGridSpec(
            num_scalar_prefetch=0,
            grid=grid,
            in_specs=in_specs,
            out_specs=pl.BlockSpec((tm, tn), lambda i, j, kk: (i, j)),
            scratch_shapes=[pltpu.VMEM((tm, tn), jnp.float32)],
        ),
        compiler_params=pltpu.CompilerParams(
            dimension_semantics=("parallel", "parallel", "arbitrary"),
            vmem_limit_bytes=32 * 1024 * 1024,
        ),
        cost_estimate=cost,
    )(*args)

    if mp != m or np_ != n:
        out_p = out_p[:m, :n]
    return out_p


# ---------------------------------------------------------------------------
# GraphConvolution.forward
# ---------------------------------------------------------------------------
def graph_convolution(x, adj, weight, bias=None):
    """Pallas implementation of GraphConvolution.forward.

    x:      [N, F_in]
    adj:    [N, N]
    weight: [F_in, F_out]
    bias:   optional, PyTorch stores [1, 1, F_out]
    returns [N, F_out]
    """
    n, f_in = x.shape
    f_out = weight.shape[1]
    out_dtype = x.dtype

    if _fused_vmem_bytes(n, f_in, f_out) <= _FUSED_VMEM_BUDGET:
        # Small node count (ML-GCN label graph): fully fused, adj VMEM-resident,
        # no HBM round-trip for the [N, F_out] intermediate.
        return _gcn_fused(x, adj, weight, bias, out_dtype)

    # Large-N fallback: two tiled matmuls; associativity swap saves
    # N^2*(F_out - F_in) MXU FLOPs when F_in <= F_out.
    if f_in <= f_out:
        ax = _tiled_matmul(adj, x)
        return _tiled_matmul(ax, weight, bias=bias, out_dtype=out_dtype)
    support = _tiled_matmul(x, weight)
    return _tiled_matmul(adj, support, bias=bias, out_dtype=out_dtype)


def init_graph_convolution_params(key, in_features, out_features, use_bias=False):
    """Deterministic re-implementation of GraphConvolution.reset_parameters."""
    stdv = 1.0 / math.sqrt(out_features)
    k_w, k_b = jax.random.split(key)
    weight = jax.random.uniform(
        k_w, (in_features, out_features), jnp.float32, minval=-stdv, maxval=stdv
    )
    bias = None
    if use_bias:
        bias = jax.random.uniform(
            k_b, (1, 1, out_features), jnp.float32, minval=-stdv, maxval=stdv
        )
    return weight, bias


def _ref_gcn(x, adj, weight, bias=None):
    """f32-accurate reference (matches kernel's HIGHEST precision)."""
    support = jnp.matmul(x, weight, precision=lax.Precision.HIGHEST)
    out = jnp.matmul(adj, support, precision=lax.Precision.HIGHEST)
    if bias is not None:
        out = out + jnp.reshape(bias, (1, -1))
    return out


if __name__ == "__main__":
    key = jax.random.PRNGKey(0)
    k_x, k_adj, k_p1, k_p2, k_x2, k_adj2, k_p3 = jax.random.split(key, 7)

    # Small shapes consistent with the module: N graph nodes, in/out features.
    N, F_IN, F_OUT = 8, 16, 32

    x = jax.random.normal(k_x, (N, F_IN), dtype=jnp.float32)
    adj = jax.random.normal(k_adj, (N, N), dtype=jnp.float32)

    # Case 1: bias=False (module default).
    w1, _ = init_graph_convolution_params(k_p1, F_IN, F_OUT, use_bias=False)
    out1 = jax.block_until_ready(graph_convolution(x, adj, w1, bias=None))
    ref1 = _ref_gcn(x, adj, w1)

    # Case 2: bias=True.
    w2, b2 = init_graph_convolution_params(k_p2, F_IN, F_OUT, use_bias=True)
    out2 = jax.block_until_ready(graph_convolution(x, adj, w2, bias=b2))
    ref2 = _ref_gcn(x, adj, w2, b2)

    # Case 3: second ML-GCN-style layer with F_in > F_out, with the LeakyReLU
    # that sits between gc1/gc2 applied in plain JAX.
    h = jnp.where(out1 > 0, out1, 0.2 * out1)
    w3, _ = init_graph_convolution_params(k_p1, F_OUT, F_IN, use_bias=False)
    out3 = jax.block_until_ready(graph_convolution(h, adj, w3, bias=None))
    ref3 = _ref_gcn(h, adj, w3)

    # Case 4: ML-GCN-like shapes (label graph), exercises the F_in reduction
    # grid (k > 1 tiles) and N not a multiple of 128.
    N2, F_IN2, F_OUT2 = 80, 300, 128
    x4 = jax.random.normal(k_x2, (N2, F_IN2), dtype=jnp.float32)
    adj4 = jax.random.normal(k_adj2, (N2, N2), dtype=jnp.float32)
    w4, b4 = init_graph_convolution_params(k_p3, F_IN2, F_OUT2, use_bias=True)
    out4 = jax.block_until_ready(graph_convolution(x4, adj4, w4, bias=b4))
    ref4 = _ref_gcn(x4, adj4, w4, b4)

    assert out1.shape == (N, F_OUT) and out2.shape == (N, F_OUT)
    assert out3.shape == (N, F_IN) and out4.shape == (N2, F_OUT2)
    assert jnp.allclose(out1, ref1, atol=1e-4, rtol=1e-4)
    assert jnp.allclose(out2, ref2, atol=1e-4, rtol=1e-4)
    assert jnp.allclose(out3, ref3, atol=1e-4, rtol=1e-4)
    assert jnp.allclose(out4, ref4, atol=1e-4, rtol=1e-4)

    print("KERNEL_OK")
</pallas_src>

<mosaic_0001>
module attributes {stable_mosaic.version = 11 : i64} {
  func.func @_gcn_fused_kernel(%arg0: i32, %arg1: i32, %arg2: memref<128x128xf32, #tpu.memory_space<vmem>>, %arg3: memref<128x128xf32, #tpu.memory_space<vmem>>, %arg4: memref<128x128xf32, #tpu.memory_space<vmem>>, %arg5: memref<128x128xf32, #tpu.memory_space<vmem>>, %arg6: memref<128x128xf32, #tpu.memory_space<vmem>>) attributes {dimension_semantics = [#tpu.dimension_semantics<parallel>, #tpu.dimension_semantics<arbitrary>], iteration_bounds = array<i64: 1, 1>, scalar_prefetch = 0 : i64, scratch_operands = 1 : i64, tpu.core_type = #tpu.core_type<tc>, window_params = [{transform_indices = @transform_0, window_bounds = array<i64: 128, 128>}, {transform_indices = @transform_1, window_bounds = array<i64: 128, 128>}, {pipeline_mode = #tpu.pipeline_mode<synchronous>, transform_indices = @transform_2, window_bounds = array<i64: 128, 128>}, {transform_indices = @transform_3, window_bounds = array<i64: 128, 128>}]} {
    %c0_i32 = arith.constant 0 : i32
    %0 = arith.cmpi eq, %arg1, %c0_i32 : i32
    %1 = arith.extui %0 : i1 to i32
    %c0_i32_0 = arith.constant 0 : i32
    %2 = arith.cmpi ne, %1, %c0_i32_0 : i32
    scf.if %2 {
      %cst_10 = arith.constant 0.000000e+00 : f32
      %12 = vector.broadcast %cst_10 : f32 to vector<128x128xf32>
      %c0_11 = arith.constant 0 : index
      %c0_12 = arith.constant 0 : index
      %13 = vector.load %arg6[%c0_11, %c0_12] : memref<128x128xf32, #tpu.memory_space<vmem>>, vector<128x128xf32>
      tpu.vector_store %arg6[%c0_11, %c0_12], %12 {strides = array<i32>} : memref<128x128xf32, #tpu.memory_space<vmem>>, vector<128x128xf32>,
    } else {
    }
    %c0 = arith.constant 0 : index
    %c0_1 = arith.constant 0 : index
    %3 = vector.load %arg6[%c0, %c0_1] : memref<128x128xf32, #tpu.memory_space<vmem>>, vector<128x128xf32>
    %c0_2 = arith.constant 0 : index
    %c0_3 = arith.constant 0 : index
    %4 = vector.load %arg2[%c0_2, %c0_3] : memref<128x128xf32, #tpu.memory_space<vmem>>, vector<128x128xf32>
    %c0_4 = arith.constant 0 : index
    %c0_5 = arith.constant 0 : index
    %5 = vector.load %arg3[%c0_4, %c0_5] : memref<128x128xf32, #tpu.memory_space<vmem>>, vector<128x128xf32>
    %cst = arith.constant dense<0.000000e+00> : vector<128x128xf32>
    %6 = tpu.matmul %4, %5, %cst {dimension_numbers = #tpu.dot_dimension_numbers<[1], [0], [0], [1], [0, 0, 1, 1], [], []>, precision = #tpu.contract_precision<fp32>} : vector<128x128xf32>, vector<128x128xf32>, vector<128x128xf32> -> vector<128x128xf32>
    %7 = arith.addf %3, %6 : vector<128x128xf32>
    %c0_6 = arith.constant 0 : index
    %c0_7 = arith.constant 0 : index
    %8 = vector.load %arg6[%c0_6, %c0_7] : memref<128x128xf32, #tpu.memory_space<vmem>>, vector<128x128xf32>
    tpu.vector_store %arg6[%c0_6, %c0_7], %7 {strides = array<i32>} : memref<128x128xf32, #tpu.memory_space<vmem>>, vector<128x128xf32>,
    %c0_i32_8 = arith.constant 0 : i32
    %9 = arith.cmpi eq, %arg1, %c0_i32_8 : i32
    %10 = arith.extui %9 : i1 to i32
    %c0_i32_9 = arith.constant 0 : i32
    %11 = arith.cmpi ne, %10, %c0_i32_9 : i32
    scf.if %11 {
      %c0_10 = arith.constant 0 : index
      %c0_11 = arith.constant 0 : index
      %12 = vector.load %arg4[%c0_10, %c0_11] : memref<128x128xf32, #tpu.memory_space<vmem>>, vector<128x128xf32>
      %c0_12 = arith.constant 0 : index
      %c0_13 = arith.constant 0 : index
      %13 = vector.load %arg6[%c0_12, %c0_13] : memref<128x128xf32, #tpu.memory_space<vmem>>, vector<128x128xf32>
      %cst_14 = arith.constant dense<0.000000e+00> : vector<128x128xf32>
      %14 = tpu.matmul %12, %13, %cst_14 {dimension_numbers = #tpu.dot_dimension_numbers<[1], [0], [0], [1], [0, 0, 1, 1], [], []>, precision = #tpu.contract_precision<fp32>} : vector<128x128xf32>, vector<128x128xf32>, vector<128x128xf32> -> vector<128x128xf32>
      %c0_15 = arith.constant 0 : index
      %c0_16 = arith.constant 0 : index
      %15 = vector.load %arg5[%c0_15, %c0_16] : memref<128x128xf32, #tpu.memory_space<vmem>>, vector<128x128xf32>
      tpu.vector_store %arg5[%c0_15, %c0_16], %14 {strides = array<i32>} : memref<128x128xf32, #tpu.memory_space<vmem>>, vector<128x128xf32>,
    } else {
    }
    return
  }
  func.func @transform_0(%arg0: i32, %arg1: i32) -> (i32, i32) {
    %c0_i32 = arith.constant 0 : i32
    %c0_i32_0 = arith.constant 0 : i32
    return %c0_i32, %arg1 : i32, i32
  }
  func.func @transform_1(%arg0: i32, %arg1: i32) -> (i32, i32) {
    %c0_i32 = arith.constant 0 : i32
    return %arg1, %arg0 : i32, i32
  }
  func.func @transform_2(%arg0: i32, %arg1: i32) -> (i32, i32) {
    %c0_i32 = arith.constant 0 : i32
    %c0_i32_0 = arith.constant 0 : i32
    %c0_i32_1 = arith.constant 0 : i32
    return %c0_i32, %c0_i32_0 : i32, i32
  }
  func.func @transform_3(%arg0: i32, %arg1: i32) -> (i32, i32) {
    %c0_i32 = arith.constant 0 : i32
    %c0_i32_0 = arith.constant 0 : i32
    return %c0_i32, %arg0 : i32, i32
  }
}

</mosaic_0001>

<bundles_post_ra>
// kernel: tpu_custom_call.1
= control target key start
LH: loop header
LB: loop body
LE: loop exit
PB: predicated region body
PF: predicated region fallthrough
CT: control target
= control target key end

     0   :  { %8 = vsyncpa [#allocation4], 0  ;;  %s2938_s0 = inlined_call_operand.hbm [shape: f32[128,128], index: 0, kind: input, shape index: {}]   ;;  %s2939_s1 = inlined_call_operand.hbm [shape: f32[128,128], index: 1, kind: input, shape index: {}]   ;;  %s2940_s2 = inlined_call_operand.hbm [shape: f32[128,128], index: 2, kind: input, shape index: {}]   ;;  %s2941_s3 = inlined_call_operand.hbm [shape: f32[128,128], index: 3, kind: output, shape index: {}]  }
   0x1   :  { %9 = vsyncpa [#allocation7], 0 }
   0x2   :  { %10 = vsyncpa [#allocation5], 0  ;;  %s28_s14 = sshll.u32 %s2939_s1, 4  ;;  %s1953_s15 = smov [#allocation6]   ;;  %s29_s14 = int_to_ptr.hbm [resolvable:$true] %s28_s14 }
   0x3   :  { %s30_s16 = sshll.u32 %s1953_s15, 4  ;;  %s15_s19 = sshll.u32 %s2938_s0, 4  ;;  %s31_s16 = int_to_ptr.vmem [resolvable:$true] %s30_s16  ;;  %s16_s19 = int_to_ptr.hbm [resolvable:$true] %s15_s19 }
   0x4   :  { %s1954_s20 = smov 128   ;;  %s1955_s21 = smov 8  }
   0x5   :  { %36 = dma.hbm_to_vmem [thread:$0]  %s29_s14, 2048, %s31_s16, [#allocation7], %s1954_s20, %s1954_s20, %s1955_s21  }
   0x6   :  { %s1956_s22 = smov [#allocation3]   ;;  %s41_s1 = sshll.u32 %s2940_s2, 4  ;;  %s42_s1 = int_to_ptr.hbm [resolvable:$true] %s41_s1 }
   0x7   :  { %s17_s23 = sshll.u32 %s1956_s22, 4  ;;  %s1957_s0 = smov [#allocation8]   ;;  %s18_s23 = int_to_ptr.vmem [resolvable:$true] %s17_s23 }
   0x8   :  { %23 = dma.hbm_to_vmem [thread:$0]  %s16_s19, 2048, %s18_s23, [#allocation4], %s1954_s20, %s1954_s20, %s1955_s21  }
   0x9   :  { %s43_s26 = sshll.u32 %s1957_s0, 4  ;;  %s44_s26 = int_to_ptr.vmem [resolvable:$true] %s43_s26 }
   0xa   :  { %49 = dma.hbm_to_vmem [thread:$0]  %s42_s1, 2048, %s44_s26, [#allocation7], %s1954_s20, %s1954_s20, %s1955_s21  }
   0xb   :  { %1947 = dma.done.wait [#allocation4], 2048  }
   0xc   :  { %1948 = vsyncadd [#allocation4], 4294965248 }
   0xd   :  { %1949 = dma.done.wait [#allocation7], 4096  }
   0xe   :  { %1950 = vsyncadd [#allocation7], 4294963200  ;;  %v129_v0 = vld [vmem:[#allocation6 + $0x78] sm:$0xff]  ;;  %v128_v1 = vld [vmem:[#allocation6 + $0x70] sm:$0xff]  ;;  %s1958_s2 = smov [#allocation9]   ;;  %s1831_s30 = sshll.u32 %s2941_s3, 4  ;;  %s1832_s30 = int_to_ptr.hbm [resolvable:$true] %s1831_s30 }
   0xf   :  { %v127_v2 = vld [vmem:[#allocation6 + $0x68] sm:$0xff]  ;;  %v1997_v3 = vand.u32 4294901760, %v129_v0  ;;  %v1999_v4 = vand.u32 4294901760, %v128_v1  ;;  %v126_v6 = vld [vmem:[#allocation6 + $0x60] sm:$0xff]  ;;  %v125_v7 = vld [vmem:[#allocation6 + $0x58] sm:$0xff]  ;;  %s1829_s27 = sshll.u32 %s1958_s2, 4  ;;  %s1830_s27 = int_to_ptr.vmem [resolvable:$true] %s1829_s27 }
  0x10   :  { %v2001_v5 = vand.u32 4294901760, %v127_v2  ;;  %v124_v8 = vld [vmem:[#allocation6 + $0x50] sm:$0xff]  ;;  %v2003_v9 = vand.u32 4294901760, %v126_v6  ;;  %v2005_v10 = vand.u32 4294901760, %v125_v7  ;;  %v123_v12 = vld [vmem:[#allocation6 + $0x48] sm:$0xff]  ;;  %v122_v13 = vld [vmem:[#allocation6 + $0x40] sm:$0xff] }
  0x11   :  { %v2007_v11 = vand.u32 4294901760, %v124_v8  ;;  %131 = vmatpush.msra.mxu0 %v1997_v3  ;;  %v2011_v14 = vsub.f32 %v129_v0, %v1997_v3  ;;  %v2014_v15 = vsub.f32 %v128_v1, %v1999_v4  ;;  %582 = vmatpush.msra.mxu3 %v1997_v3  ;;  %v2020_v17 = vand.u32 4294901760, %v123_v12  ;;  %v121_v18 = vld [vmem:[#allocation6 + $0x38] sm:$0xff]  ;;  %v120_v29 = vld [vmem:[#allocation6 + $0x30] sm:$0xff]  ;;  %v119_v36 = vld [vmem:[#allocation6 + $0x28] sm:$0xff] }
  0x12   :  { %v2018_v16 = vsub.f32 %v127_v2, %v2001_v5  ;;  %v2023_v19 = vsub.f32 %v126_v6, %v2003_v9  ;;  %v2026_v20 = vsub.f32 %v125_v7, %v2005_v10  ;;  %v2028_v21 = vand.u32 4294901760, %v122_v13  ;;  %v118_v43 = vld [vmem:[#allocation6 + $0x20] sm:$0xff]  ;;  %v117_v49 = vld [vmem:[#allocation6 + $0x18] sm:$0xff]  ;;  %v116_v55 = vld [vmem:[#allocation6 + $0x10] sm:$0xff] }
  0x13   :  { %v2031_v22 = vsub.f32 %v124_v8, %v2007_v11  ;;  %133 = vmatpush.msra.mxu0 %v1999_v4  ;;  %454 = vmatpush.msra.mxu2 %v2011_v14  ;;  %v293_v23 = vand.u32 4294901760, %v2011_v14  ;;  %v299_v24 = vand.u32 4294901760, %v2014_v15  ;;  %v2040_v27 = vand.u32 4294901760, %v121_v18  ;;  %v98_v56 = vld [vmem:[#allocation3] sm:$0xff]  ;;  %v115_v62 = vld [vmem:[#allocation6 + $0x8] sm:$0xff] }
  0x14   :  { %v305_v25 = vand.u32 4294901760, %v2018_v16  ;;  %584 = vmatpush.msra.mxu3 %v1999_v4  ;;  %v311_v26 = vand.u32 4294901760, %v2023_v19  ;;  %v2043_v28 = vsub.f32 %v123_v12, %v2020_v17  ;;  %v317_v33 = vand.u32 4294901760, %v2026_v20  ;;  %v114_v8 = vld [vmem:[#allocation6] sm:$0xff] }
  0x15   :  { %135 = vmatpush.msra.mxu0 %v2001_v5  ;;  %457 = vmatpush.msra.mxu2 %v2014_v15  ;;  %v294_v30 = vsub.f32 %v2011_v14, %v293_v23  ;;  %v300_v31 = vsub.f32 %v2014_v15, %v299_v24  ;;  %v323_v34 = vand.u32 4294901760, %v2031_v22  ;;  %v2060_v35 = vsub.f32 %v122_v13, %v2028_v21 }
  0x16   :  { %v306_v32 = vsub.f32 %v2018_v16, %v305_v25  ;;  %586 = vmatpush.msra.mxu3 %v2001_v5  ;;  %v312_v39 = vsub.f32 %v2023_v19, %v311_v26  ;;  %v2067_v40 = vand.u32 4294901760, %v120_v29  ;;  %v329_v41 = vand.u32 4294901760, %v2043_v28 }
  0x17   :  { %137 = vmatpush.msra.mxu0 %v2003_v9  ;;  %v295_v37 = vand.u32 4294901760, %v294_v30  ;;  %460 = vmatpush.msra.mxu2 %v2018_v16  ;;  %v301_v38 = vand.u32 4294901760, %v300_v31  ;;  %v2072_v42 = vsub.f32 %v121_v18, %v2040_v27  ;;  %v318_v45 = vsub.f32 %v2026_v20, %v317_v33  ;;  %v99_v30 = vld [vmem:[#allocation3 + $0x8] sm:$0xff] }
  0x18   :  { %588 = vmatpush.msra.mxu3 %v2003_v9  ;;  %v307_v44 = vand.u32 4294901760, %v306_v32  ;;  %v2078_v46 = vand.u32 4294901760, %v119_v36  ;;  %v324_v47 = vsub.f32 %v2031_v22, %v323_v34  ;;  %v335_v48 = vand.u32 4294901760, %v2060_v35 }
  0x19   :  { %139 = vmatpush.msra.mxu0 %v2005_v10  ;;  %296 = vmatpush.msra.mxu1 %v295_v37  ;;  %v313_v50 = vand.u32 4294901760, %v312_v39  ;;  %v2087_v51 = vand.u32 4294901760, %v118_v43  ;;  %v2090_v52 = vsub.f32 %v120_v29, %v2067_v40  ;;  %v330_v53 = vsub.f32 %v2043_v28, %v329_v41 }
  0x1a   :  { %463 = vmatpush.msra.mxu2 %v2023_v19  ;;  %590 = vmatpush.msra.mxu3 %v2005_v10  ;;  %v341_v54 = vand.u32 4294901760, %v2072_v42  ;;  %v319_v57 = vand.u32 4294901760, %v318_v45  ;;  %v2099_v58 = vand.u32 4294901760, %v117_v49  ;;  %v2102_v59 = vsub.f32 %v119_v36, %v2078_v46  ;;  %v103_v19 = vld [vmem:[#allocation3 + $0x28] sm:$0xff] }
  0x1b   :  { %141 = vmatpush.msra.mxu0 %v2007_v11  ;;  %302 = vmatpush.msra.mxu1 %v301_v38  ;;  %v325_v60 = vand.u32 4294901760, %v324_v47  ;;  %v336_v61 = vsub.f32 %v2060_v35, %v335_v48  ;;  %v2110_v63 = vand.u32 4294901760, %v116_v55  ;;  %v347_v0 = vand.u32 4294901760, %v2090_v52 }
  0x1c   :  { %466 = vmatpush.msra.mxu2 %v2026_v20  ;;  %592 = vmatpush.msra.mxu3 %v2007_v11  ;;  %v2114_v1 = vsub.f32 %v118_v43, %v2087_v51  ;;  %v2116_v2 = vand.u32 4294901760, %v98_v56  ;;  %v331_v6 = vand.u32 4294901760, %v330_v53  ;;  %v342_v7 = vsub.f32 %v2072_v42, %v341_v54 }
  0x1d   :  { %143 = vmatpush.msra.mxu0 %v2020_v17  ;;  %308 = vmatpush.msra.mxu1 %v307_v44  ;;  %v2124_v12 = vand.u32 4294901760, %v115_v62  ;;  %v353_v13 = vand.u32 4294901760, %v2102_v59  ;;  %v2128_v18 = vsub.f32 %v117_v49, %v2099_v58  ;;  %v337_v31 = vand.u32 4294901760, %v336_v61 }
  0x1e   :  { %469 = vmatpush.msra.mxu2 %v2031_v22  ;;  %594 = vmatpush.msra.mxu3 %v2020_v17  ;;  %v2131_v29 = vsub.f32 %v98_v56, %v2116_v2  ;;  %v348_v32 = vsub.f32 %v2090_v52, %v347_v0  ;;  %v2139_v36 = vand.u32 4294901760, %v114_v8  ;;  %v359_v37 = vand.u32 4294901760, %v2114_v1 }
  0x1f   :  { %145 = vmatpush.msra.mxu0 %v2028_v21  ;;  %314 = vmatpush.msra.mxu1 %v313_v50  ;;  %v2143_v38 = vsub.f32 %v116_v55, %v2110_v63  ;;  %v2148_v43 = vand.u32 4294901760, %v99_v30  ;;  %v343_v44 = vand.u32 4294901760, %v342_v7  ;;  %v354_v45 = vsub.f32 %v2102_v59, %v353_v13  ;;  %v100_v7 = vld [vmem:[#allocation3 + $0x10] sm:$0xff] }
  0x20   :  { %472 = vmatpush.msra.mxu2 %v2043_v28  ;;  %596 = vmatpush.msra.mxu3 %v2028_v21  ;;  %v164_v39 = vand.u32 4294901760, %v2131_v29  ;;  %v2942_v47 = vand.u32 4294901760, %v2128_v18  ;;  %v2156_v49 = vsub.f32 %v115_v62, %v2124_v12  ;;  %v349_v50 = vand.u32 4294901760, %v348_v32 }
  0x21   :  { %147 = vmatpush.msra.mxu0 %v2040_v27  ;;  %320 = vmatpush.msra.mxu1 %v319_v57  ;;  %v360_v53 = vsub.f32 %v2114_v1, %v359_v37  ;;  %v2944_v55 = vand.u32 4294901760, %v2143_v38  ;;  %v2166_v56 = vsub.f32 %v114_v8, %v2139_v36  ;;  %v355_v61 = vand.u32 4294901760, %v354_v45 }
  0x22   :  { %475 = vmatpush.msra.mxu2 %v2060_v35  ;;  %598 = vmatpush.msra.mxu3 %v2040_v27  ;;  %v165_v57 = vsub.f32 %v2131_v29, %v164_v39  ;;  %v366_v62 = vsub.f32 %v2128_v18, %v2942_v47  ;;  %v2186_v45 = vand.u32 4294901760, %v100_v7  ;;  %v2231_v20 = vand.u32 4294901760, %v103_v19 }
  0x23   :  { %149 = vmatpush.msra.mxu0 %v2067_v40  ;;  %326 = vmatpush.msra.mxu1 %v325_v60  ;;  %v171_v60 = vsub.f32 %v99_v30, %v2148_v43  ;;  %v361_v8 = vand.u32 4294901760, %v360_v53  ;;  %v372_v30 = vsub.f32 %v2143_v38, %v2944_v55  ;;  %v101_v55 = vld [vmem:[#allocation3 + $0x18] sm:$0xff]  ;;  %v2951_v28 = vand.u32 4294901760, %v2143_v38 }
  0x24   :  { %478 = vmatpush.msra.mxu2 %v2072_v42  ;;  %600 = vmatpush.msra.mxu3 %v2067_v40  ;;  %v166_v32 = vand.u32 4294901760, %v165_v57  ;;  %v367_v47 = vand.u32 4294901760, %v366_v62  ;;  %v179_v62 = vsub.f32 %v100_v7, %v2186_v45  ;;  %v203_v22 = vsub.f32 %v103_v19, %v2231_v20 }
  0x25   :  { %151 = vmatpush.msra.mxu0 %v2078_v46  ;;  %332 = vmatpush.msra.mxu1 %v331_v6  ;;  %v2943_v6 = vand.u32 4294901760, %v2156_v49  ;;  %v373_v53 = vand.u32 4294901760, %v372_v30  ;;  %v2952_v35 = vand.u32 4294901760, %v2156_v49  ;;  %v2953_v42 = vand.u32 4294901760, %v2166_v56 }
  0x26   :  { %481 = vmatpush.msra.mxu2 %v2090_v52  ;;  %602 = vmatpush.msra.mxu3 %v2078_v46  ;;  %v106_v52 = vld [vmem:[#allocation3 + $0x40] sm:$0xff] }
  0x27   :  { %153 = vmatpush.msra.mxu0 %v2087_v51  ;;  %338 = vmatpush.msra.mxu1 %v337_v31  ;;  %v2945_v31 = vand.u32 4294901760, %v2166_v56 }
  0x28   :  { %484 = vmatpush.msra.mxu2 %v2102_v59  ;;  %604 = vmatpush.msra.mxu3 %v2087_v51  ;;  %v2270_v59 = vand.u32 4294901760, %v106_v52 }
  0x29   :  { %155 = vmatpush.msra.mxu0 %v2099_v58  ;;  %344 = vmatpush.msra.mxu1 %v343_v44  ;;  %v172_v44 = vand.u32 4294901760, %v171_v60  ;;  %v384_v57 = vsub.f32 %v2166_v56, %v2945_v31  ;;  %v180_v31 = vand.u32 4294901760, %v179_v62 }
  0x2a   :  { %487 = vmatpush.msra.mxu2 %v2114_v1  ;;  %606 = vmatpush.msra.mxu3 %v2099_v58 }
  0x2b   :  { %157 = vmatpush.msra.mxu0 %v2110_v63  ;;  %350 = vmatpush.msra.mxu1 %v349_v50  ;;  %v378_v50 = vsub.f32 %v2156_v49, %v2943_v6 }
  0x2c   :  { %490 = vmatpush.msra.mxu2 %v2128_v18  ;;  %608 = vmatpush.msra.mxu3 %v2110_v63 }
  0x2d   :  { %159 = vmatpush.msra.mxu0 %v2124_v12  ;;  %356 = vmatpush.msra.mxu1 %v355_v61  ;;  %v173_v61 = vsub.f32 %v171_v60, %v172_v44  ;;  %v379_v6 = vand.u32 4294901760, %v378_v50 }
  0x2e   :  { %493 = vmatpush.msra.mxu2 %v2143_v38  ;;  %610 = vmatpush.msra.mxu3 %v2124_v12 }
  0x2f   :  { %161 = vmatpush.msra.mxu0 %v2139_v36  ;;  %362 = vmatpush.msra.mxu1 %v361_v8  ;;  %v385_v8 = vand.u32 4294901760, %v384_v57  ;;  %v174_v30 = vand.u32 4294901760, %v173_v61 }
  0x30   :  { %167 = vmatmul.f32.vlgmr.msra.gmra.mxu0 %v166_v32  ;;  %496 = vmatpush.msra.mxu2 %v2156_v49  ;;  %v2203_v32 = vand.u32 4294901760, %v101_v55 }
  0x31   :  { %368 = vmatpush.msra.mxu1 %v367_v47  ;;  %612 = vmatpush.msra.mxu3 %v2139_v36 }
  0x32   :  { %499 = vmatpush.msra.mxu2 %v2166_v56  ;;  %616 = vmatmul.f32.vlgmr.msra.gmra.mxu3 %v164_v39  ;;  %v181_v39 = vsub.f32 %v179_v62, %v180_v31  ;;  %v187_v47 = vsub.f32 %v101_v55, %v2203_v32 }
  0x33   :  { %374 = vmatpush.msra.mxu1 %v373_v53  ;;  %502 = vmatmul.f32.vlgmr.msra.gmra.mxu2 %v2131_v29  ;;  %v102_v29 = vld [vmem:[#allocation3 + $0x20] sm:$0xff] }
  0x34   :  { %713 = vmatpush.msrb.mxu0 %v293_v23  ;;  %v182_v14 = vand.u32 4294901760, %v181_v39  ;;  %v188_v15 = vand.u32 4294901760, %v187_v47  ;;  %v2216_v23 = vand.u32 4294901760, %v102_v29  ;;  %v110_v53 = vld [vmem:[#allocation3 + $0x60] sm:$0xff]  ;;  %v111_v39 = vld [vmem:[#allocation3 + $0x68] sm:$0xff] }
  0x35   :  { %380 = vmatpush.msra.mxu1 %v379_v6 }
  0x36   :  { %717 = vmatpush.msrb.mxu0 %v299_v24  ;;  %v195_v16 = vsub.f32 %v102_v29, %v2216_v23  ;;  %v104_v24 = vld [vmem:[#allocation3 + $0x30] sm:$0xff] }
  0x37   :  { %386 = vmatpush.msra.mxu1 %v385_v8 }
  0x38   :  { %175 = vmatmul.f32.gmra.mxu0 %v174_v30  ;;  %388 = vmatmul.f32.vlgmr.msra.gmra.mxu1 %v2116_v2 }
  0x39   :  { %721 = vmatpush.msrb.mxu0 %v305_v25  ;;  %840 = vmatpush.msrb.mxu1 %v1997_v3  ;;  %v189_v3 = vsub.f32 %v187_v47, %v188_v15  ;;  %v2246_v25 = vand.u32 4294901760, %v104_v24 }
  0x3a   :  { %622 = vmatmul.f32.gmra.mxu3 %v172_v44 }
  0x3b   :  { %507 = vmatmul.f32.gmra.mxu2 %v171_v60  ;;  %725 = vmatpush.msrb.mxu0 %v311_v26  ;;  %v2950_v26 = vand.u32 4294901760, %v2128_v18  ;;  %v109_v60 = vld [vmem:[#allocation3 + $0x58] sm:$0xff] }
  0x3c   :  { %842 = vmatpush.msrb.mxu1 %v1999_v4  ;;  %v190_v4 = vand.u32 4294901760, %v189_v3 }
  0x3d   :  { %729 = vmatpush.msrb.mxu0 %v317_v33  ;;  %v211_v33 = vsub.f32 %v104_v24, %v2246_v25  ;;  %v113_v24 = vld [vmem:[#allocation3 + $0x78] sm:$0xff] }
  0x3e   :  { %844 = vmatpush.msrb.mxu1 %v2001_v5  ;;  %v196_v5 = vand.u32 4294901760, %v195_v16 }
  0x3f   :  { %733 = vmatpush.msrb.mxu0 %v323_v34  ;;  %v105_v34 = vld [vmem:[#allocation3 + $0x38] sm:$0xff] }
  0x40   :  { %183 = vmatmul.f32.gmra.mxu0 %v182_v14  ;;  %392 = vmatmul.f32.gmra.mxu1 %v2148_v43  ;;  %v2291_v14 = vand.u32 4294901760, %v111_v39 }
  0x41   :  { %737 = vmatpush.msrb.mxu0 %v329_v41  ;;  %846 = vmatpush.msrb.mxu1 %v2003_v9  ;;  %v197_v9 = vsub.f32 %v195_v16, %v196_v5  ;;  %v2260_v41 = vand.u32 4294901760, %v105_v34 }
  0x42   :  { %628 = vmatmul.f32.gmra.mxu3 %v180_v31  ;;  %v2283_v31 = vand.u32 4294901760, %v109_v60  ;;  %v267_v3 = vsub.f32 %v111_v39, %v2291_v14 }
  0x43   :  { %512 = vmatmul.f32.gmra.mxu2 %v179_v62  ;;  %741 = vmatpush.msrb.mxu0 %v335_v48  ;;  %v219_v48 = vsub.f32 %v105_v34, %v2260_v41  ;;  %v2287_v62 = vand.u32 4294901760, %v110_v53 }
  0x44   :  { %848 = vmatpush.msrb.mxu1 %v2005_v10  ;;  %v198_v10 = vand.u32 4294901760, %v197_v9  ;;  %v251_v50 = vsub.f32 %v109_v60, %v2283_v31 }
  0x45   :  { %745 = vmatpush.msrb.mxu0 %v341_v54  ;;  %v220_v54 = vand.u32 4294901760, %v219_v48  ;;  %v259_v30 = vsub.f32 %v110_v53, %v2287_v62 }
  0x46   :  { %850 = vmatpush.msrb.mxu1 %v2007_v11  ;;  %v204_v11 = vand.u32 4294901760, %v203_v22  ;;  %v252_v61 = vand.u32 4294901760, %v251_v50 }
  0x47   :  { %749 = vmatpush.msrb.mxu0 %v347_v0  ;;  %v107_v0 = vld [vmem:[#allocation3 + $0x48] sm:$0xff]  ;;  %v260_v29 = vand.u32 4294901760, %v259_v30 }
  0x48   :  { %191 = vmatmul.f32.gmra.mxu0 %v190_v4  ;;  %396 = vmatmul.f32.gmra.mxu1 %v2186_v45  ;;  %v253_v8 = vsub.f32 %v251_v50, %v252_v61  ;;  %v268_v4 = vand.u32 4294901760, %v267_v3 }
  0x49   :  { %753 = vmatpush.msrb.mxu0 %v353_v13  ;;  %852 = vmatpush.msrb.mxu1 %v2020_v17  ;;  %v205_v17 = vsub.f32 %v203_v22, %v204_v11  ;;  %v2275_v13 = vand.u32 4294901760, %v107_v0 }
  0x4a   :  { %634 = vmatmul.f32.gmra.mxu3 %v188_v15  ;;  %v261_v15 = vsub.f32 %v259_v30, %v260_v29  ;;  %v269_v9 = vsub.f32 %v267_v3, %v268_v4 }
  0x4b   :  { %517 = vmatmul.f32.gmra.mxu2 %v187_v47  ;;  %757 = vmatpush.msrb.mxu0 %v359_v37  ;;  %v235_v18 = vsub.f32 %v107_v0, %v2275_v13  ;;  %v254_v47 = vand.u32 4294901760, %v253_v8 }
  0x4c   :  { %854 = vmatpush.msrb.mxu1 %v2028_v21  ;;  %v206_v21 = vand.u32 4294901760, %v205_v17  ;;  %v262_v19 = vand.u32 4294901760, %v261_v15 }
  0x4d   :  { %761 = vmatpush.msrb.mxu0 %v2950_v26  ;;  %v236_v38 = vand.u32 4294901760, %v235_v18  ;;  %v2299_v26 = vand.u32 4294901760, %v113_v24 }
  0x4e   :  { %856 = vmatpush.msrb.mxu1 %v2040_v27  ;;  %v212_v27 = vand.u32 4294901760, %v211_v33 }
  0x4f   :  { %765 = vmatpush.msrb.mxu0 %v2951_v28  ;;  %v237_v55 = vsub.f32 %v235_v18, %v236_v38  ;;  %v283_v17 = vsub.f32 %v113_v24, %v2299_v26 }
  0x50   :  { %199 = vmatmul.f32.gmra.mxu0 %v198_v10  ;;  %400 = vmatmul.f32.gmra.mxu1 %v2203_v32  ;;  %v270_v10 = vand.u32 4294901760, %v269_v9 }
  0x51   :  { %858 = vmatpush.msrb.mxu1 %v2067_v40  ;;  %769 = vmatpush.msrb.mxu0 %v2952_v35  ;;  %v213_v40 = vsub.f32 %v211_v33, %v212_v27  ;;  %v238_v6 = vand.u32 4294901760, %v237_v55  ;;  %v284_v34 = vand.u32 4294901760, %v283_v17 }
  0x52   :  { %640 = vmatmul.f32.gmra.mxu3 %v196_v5 }
  0x53   :  { %522 = vmatmul.f32.gmra.mxu2 %v195_v16  ;;  %860 = vmatpush.msrb.mxu1 %v2078_v46  ;;  %v214_v46 = vand.u32 4294901760, %v213_v40  ;;  %v112_v16 = vld [vmem:[#allocation3 + $0x70] sm:$0xff]  ;;  %v285_v35 = vsub.f32 %v283_v17, %v284_v34 }
  0x54   :  { %773 = vmatpush.msrb.mxu0 %v2953_v42  ;;  %v2295_v5 = vand.u32 4294901760, %v112_v16 }
  0x55   :  { %862 = vmatpush.msrb.mxu1 %v2087_v51  ;;  %v221_v51 = vsub.f32 %v219_v48, %v220_v54 }
  0x57   :  { %864 = vmatpush.msrb.mxu1 %v2099_v58  ;;  %v227_v58 = vsub.f32 %v106_v52, %v2270_v59 }
  0x58   :  { %207 = vmatmul.f32.gmra.mxu0 %v206_v21  ;;  %404 = vmatmul.f32.gmra.mxu1 %v2216_v23  ;;  %v286_v21 = vand.u32 4294901760, %v285_v35 }
  0x59   :  { %866 = vmatpush.msrb.mxu1 %v2110_v63  ;;  %v222_v63 = vand.u32 4294901760, %v221_v51  ;;  %v228_v1 = vand.u32 4294901760, %v227_v58 }
  0x5a   :  { %646 = vmatmul.f32.gmra.mxu3 %v204_v11 }
  0x5b   :  { %527 = vmatmul.f32.gmra.mxu2 %v203_v22  ;;  %868 = vmatpush.msrb.mxu1 %v2124_v12  ;;  %v229_v12 = vsub.f32 %v227_v58, %v228_v1  ;;  %v275_v22 = vsub.f32 %v112_v16, %v2295_v5 }
  0x5d   :  { %870 = vmatpush.msrb.mxu1 %v2139_v36  ;;  %v108_v36 = vld [vmem:[#allocation3 + $0x50] sm:$0xff]  ;;  %v230_v37 = vand.u32 4294901760, %v229_v12  ;;  %v276_v11 = vand.u32 4294901760, %v275_v22 }
  0x5e   :  { %v2279_v49 = vand.u32 4294901760, %v108_v36 }
  0x5f   :  { %v277_v28 = vsub.f32 %v275_v22, %v276_v11 }
  0x60   :  { %215 = vmatmul.f32.gmra.mxu0 %v214_v46  ;;  %408 = vmatmul.f32.gmra.mxu1 %v2231_v20  ;;  %v243_v56 = vsub.f32 %v108_v36, %v2279_v49 }
  0x62   :  { %652 = vmatmul.f32.gmra.mxu3 %v212_v27  ;;  %v244_v7 = vand.u32 4294901760, %v243_v56 }
  0x63   :  { %532 = vmatmul.f32.gmra.mxu2 %v211_v33  ;;  %v278_v33 = vand.u32 4294901760, %v277_v28 }
  0x64   :  { %v245_v44 = vsub.f32 %v243_v56, %v244_v7 }
  0x66   :  { %v246_v57 = vand.u32 4294901760, %v245_v44 }
  0x68   :  { %223 = vmatmul.f32.gmra.mxu0 %v222_v63  ;;  %412 = vmatmul.f32.gmra.mxu1 %v2246_v25 }
  0x6a   :  { %658 = vmatmul.f32.gmra.mxu3 %v220_v54 }
  0x6b   :  { %537 = vmatmul.f32.gmra.mxu2 %v219_v48 }
  0x70   :  { %231 = vmatmul.f32.gmra.mxu0 %v230_v37  ;;  %416 = vmatmul.f32.gmra.mxu1 %v2260_v41 }
  0x72   :  { %664 = vmatmul.f32.gmra.mxu3 %v228_v1 }
  0x73   :  { %542 = vmatmul.f32.gmra.mxu2 %v227_v58 }
  0x78   :  { %239 = vmatmul.f32.gmra.mxu0 %v238_v6  ;;  %420 = vmatmul.f32.gmra.mxu1 %v2270_v59 }
  0x7a   :  { %670 = vmatmul.f32.gmra.mxu3 %v236_v38 }
  0x7b   :  { %547 = vmatmul.f32.gmra.mxu2 %v235_v18 }
  0x80   :  { %247 = vmatmul.f32.gmra.mxu0 %v246_v57  ;;  %424 = vmatmul.f32.gmra.mxu1 %v2275_v13 }
  0x82   :  { %676 = vmatmul.f32.gmra.mxu3 %v244_v7 }
  0x83   :  { %552 = vmatmul.f32.gmra.mxu2 %v243_v56 }
  0x88   :  { %255 = vmatmul.f32.gmra.mxu0 %v254_v47  ;;  %428 = vmatmul.f32.gmra.mxu1 %v2279_v49 }
  0x8a   :  { %682 = vmatmul.f32.gmra.mxu3 %v252_v61 }
  0x8b   :  { %557 = vmatmul.f32.gmra.mxu2 %v251_v50 }
  0x90   :  { %263 = vmatmul.f32.gmra.mxu0 %v262_v19  ;;  %432 = vmatmul.f32.gmra.mxu1 %v2283_v31 }
  0x92   :  { %688 = vmatmul.f32.gmra.mxu3 %v260_v29 }
  0x93   :  { %562 = vmatmul.f32.gmra.mxu2 %v259_v30 }
  0x98   :  { %271 = vmatmul.f32.gmra.mxu0 %v270_v10  ;;  %436 = vmatmul.f32.gmra.mxu1 %v2287_v62 }
  0x9a   :  { %694 = vmatmul.f32.gmra.mxu3 %v268_v4 }
  0x9b   :  { %567 = vmatmul.f32.gmra.mxu2 %v267_v3 }
  0xa0   :  { %279 = vmatmul.f32.gmra.mxu0 %v278_v33  ;;  %440 = vmatmul.f32.gmra.mxu1 %v2291_v14 }
  0xa2   :  { %700 = vmatmul.f32.gmra.mxu3 %v276_v11 }
  0xa3   :  { %572 = vmatmul.f32.gmra.mxu2 %v275_v22 }
  0xa8   :  { %287 = vmatmul.f32.gmra.mxu0 %v286_v21  ;;  %444 = vmatmul.f32.gmra.mxu1 %v2295_v5 }
  0xaa   :  { %706 = vmatmul.f32.gmra.mxu3 %v284_v34 }
  0xab   :  { %577 = vmatmul.f32.gmra.mxu2 %v283_v17 }
  0xad   :  { %v2305_v27 = vpop.f32.mrf.mxu0 }
  0xb0   :  { %448 = vmatmul.f32.gmra.mxu1 %v2299_v26  ;;  %775 = vmatmul.f32.vlgmr.msrb.gmra.mxu0 %v2116_v2 }
  0xb5   :  { %v2309_v42 = vpop.f32.mrf.mxu0  ;;  %v2311_v40 = vpop.f32.mrf.mxu1 }
  0xb6   :  { %v2381_v55 = vpop.f32.mrf.mxu3 }
  0xb8   :  { %779 = vmatmul.f32.gmra.mxu0 %v2148_v43  ;;  %872 = vmatmul.f32.vlgmr.msrb.gmra.mxu1 %v2116_v2 }
  0xbd   :  { %v2315_v48 = vpop.f32.mrf.mxu0  ;;  %v2317_v52 = vpop.f32.mrf.mxu1 }
  0xc0   :  { %783 = vmatmul.f32.gmra.mxu0 %v2186_v45  ;;  %876 = vmatmul.f32.gmra.mxu1 %v2148_v43 }
  0xc5   :  { %v2321_v46 = vpop.f32.mrf.mxu0  ;;  %v2323_v54 = vpop.f32.mrf.mxu1 }
  0xc8   :  { %787 = vmatmul.f32.gmra.mxu0 %v2203_v32  ;;  %880 = vmatmul.f32.gmra.mxu1 %v2186_v45 }
  0xcd   :  { %v2327_v51 = vpop.f32.mrf.mxu0  ;;  %v2329_v58 = vpop.f32.mrf.mxu1 }
  0xce   :  { %2954 = vst [vmem:[#allocation13_spill] sm:$0xff] %v2329_v58 }
  0xd0   :  { %791 = vmatmul.f32.gmra.mxu0 %v2216_v23  ;;  %884 = vmatmul.f32.gmra.mxu1 %v2203_v32 }
  0xd5   :  { %v2333_v2 = vpop.f32.mrf.mxu0  ;;  %v2335_v0 = vpop.f32.mrf.mxu1 }
  0xd8   :  { %795 = vmatmul.f32.gmra.mxu0 %v2231_v20  ;;  %888 = vmatmul.f32.gmra.mxu1 %v2216_v23 }
  0xdd   :  { %v2339_v43 = vpop.f32.mrf.mxu0  ;;  %v2341_v63 = vpop.f32.mrf.mxu1 }
  0xe0   :  { %799 = vmatmul.f32.gmra.mxu0 %v2246_v25  ;;  %892 = vmatmul.f32.gmra.mxu1 %v2231_v20 }
  0xe5   :  { %v2345_v45 = vpop.f32.mrf.mxu0  ;;  %v2347_v1 = vpop.f32.mrf.mxu1 }
  0xe8   :  { %803 = vmatmul.f32.gmra.mxu0 %v2260_v41  ;;  %896 = vmatmul.f32.gmra.mxu1 %v2246_v25 }
  0xed   :  { %v2351_v32 = vpop.f32.mrf.mxu0  ;;  %v2353_v12 = vpop.f32.mrf.mxu1 }
  0xf0   :  { %807 = vmatmul.f32.gmra.mxu0 %v2270_v59  ;;  %900 = vmatmul.f32.gmra.mxu1 %v2260_v41  ;;  %v2375_v41 = vpop.f32.mrf.mxu2 }
  0xf5   :  { %v2357_v23 = vpop.f32.mrf.mxu0  ;;  %v2359_v18 = vpop.f32.mrf.mxu1 }
  0xf8   :  { %811 = vmatmul.f32.gmra.mxu0 %v2275_v13  ;;  %904 = vmatmul.f32.gmra.mxu1 %v2270_v59  ;;  %v2389_v60 = vpop.f32.mrf.mxu2 }
  0xfd   :  { %v2363_v20 = vpop.f32.mrf.mxu0  ;;  %v2365_v36 = vpop.f32.mrf.mxu1 }
 0x100   :  { %815 = vmatmul.f32.gmra.mxu0 %v2279_v49  ;;  %908 = vmatmul.f32.gmra.mxu1 %v2275_v13  ;;  %v2399_v44 = vpop.f32.mrf.mxu2 }
 0x101   :  { %2956 = vst [vmem:[#allocation15_spill] sm:$0xff] %v2399_v44 }
 0x105   :  { %v2369_v25 = vpop.f32.mrf.mxu0  ;;  %v2371_v37 = vpop.f32.mrf.mxu1 }
 0x108   :  { %819 = vmatmul.f32.gmra.mxu0 %v2283_v31  ;;  %912 = vmatmul.f32.gmra.mxu1 %v2279_v49  ;;  %v2393_v49 = vpop.f32.mrf.mxu3  ;;  %v2409_v57 = vpop.f32.mrf.mxu2 }
 0x109   :  { %2955 = vst [vmem:[#allocation14_spill] sm:$0xff] %v2393_v49 }
 0x10a   :  { %2958 = vst [vmem:[#allocation17_spill] sm:$0xff] %v2409_v57 }
 0x10d   :  { %v2377_v38 = vpop.f32.mrf.mxu0  ;;  %v2379_v59 = vpop.f32.mrf.mxu1 }
 0x110   :  { %823 = vmatmul.f32.gmra.mxu0 %v2287_v62  ;;  %916 = vmatmul.f32.gmra.mxu1 %v2283_v31  ;;  %v2403_v31 = vpop.f32.mrf.mxu3  ;;  %v2418_v30 = vpop.f32.mrf.mxu2 }
 0x111   :  { %2957 = vst [vmem:[#allocation16_spill] sm:$0xff] %v2403_v31 }
 0x112   :  { %2961 = vst [vmem:[#allocation20_spill] sm:$0xff] %v2418_v30 }
 0x115   :  { %v2385_v13 = vpop.f32.mrf.mxu0  ;;  %v2387_v56 = vpop.f32.mrf.mxu1 }
 0x118   :  { %827 = vmatmul.f32.gmra.mxu0 %v2291_v14  ;;  %920 = vmatmul.f32.gmra.mxu1 %v2287_v62  ;;  %v2415_v8 = vpop.f32.mrf.mxu3  ;;  %v2430_v3 = vpop.f32.mrf.mxu2 }
 0x119   :  { %2960 = vst [vmem:[#allocation19_spill] sm:$0xff] %v2415_v8 }
 0x11a   :  { %2967 = vst [vmem:[#allocation26_spill] sm:$0xff] %v2430_v3  ;;  %v390_v3 = vadd.f32 %v2311_v40, %v2305_v27 }
 0x11d   :  { %v2395_v6 = vpop.f32.mrf.mxu0  ;;  %v2397_v7 = vpop.f32.mrf.mxu1 }
 0x120   :  { %831 = vmatmul.f32.gmra.mxu0 %v2295_v5  ;;  %924 = vmatmul.f32.gmra.mxu1 %v2291_v14  ;;  %v2424_v29 = vpop.f32.mrf.mxu3 }
 0x121   :  { %2964 = vst [vmem:[#allocation23_spill] sm:$0xff] %v2424_v29 }
 0x125   :  { %v2405_v50 = vpop.f32.mrf.mxu0  ;;  %v445_v53 = vpop.f32.mrf.mxu1 }
 0x128   :  { %835 = vmatmul.f32.gmra.mxu0 %v2299_v26  ;;  %928 = vmatmul.f32.gmra.mxu1 %v2295_v5  ;;  %v2432_v16 = vpop.f32.mrf.mxu3  ;;  %v2438_v5 = vpop.f32.mrf.mxu2 }
 0x129   :  { %2968 = vst [vmem:[#allocation27_spill] sm:$0xff] %v2432_v16 }
 0x12d   :  { %v2411_v61 = vpop.f32.mrf.mxu1  ;;  %v2413_v62 = vpop.f32.mrf.mxu0 }
 0x12e   :  { %2959 = vst [vmem:[#allocation18_spill] sm:$0xff] %v2413_v62  ;;  %v422_v62 = vadd.f32 %v2359_v18, %v2351_v32 }
 0x130   :  { %932 = vmatmul.f32.gmra.mxu1 %v2299_v26  ;;  %v2440_v9 = vpop.f32.mrf.mxu3  ;;  %v2446_v10 = vpop.f32.mrf.mxu2 }
 0x131   :  { %2971 = vst [vmem:[#allocation30_spill] sm:$0xff] %v2440_v9  ;;  %v438_v9 = vadd.f32 %v2387_v56, %v2377_v38  ;;  %v426_v38 = vadd.f32 %v2365_v36, %v2357_v23 }
 0x135   :  { %v2420_v39 = vpop.f32.mrf.mxu0  ;;  %v2422_v47 = vpop.f32.mrf.mxu1 }
 0x136   :  { %2962 = vst [vmem:[#allocation21_spill] sm:$0xff] %v2420_v39 }
 0x137   :  { %2963 = vst [vmem:[#allocation22_spill] sm:$0xff] %v2422_v47 }
 0x138   :  { %v2452_v28 = vpop.f32.mrf.mxu3  ;;  %v543_v17 = vpop.f32.mrf.mxu2 }
 0x139   :  { %2976 = vst [vmem:[#allocation35_spill] sm:$0xff] %v2452_v28 }
 0x13d   :  { %v2426_v14 = vpop.f32.mrf.mxu0  ;;  %v2428_v15 = vpop.f32.mrf.mxu1 }
 0x13e   :  { %2965 = vst [vmem:[#allocation24_spill] sm:$0xff] %v2426_v14  ;;  %v544_v14 = vadd.f32 %v543_v17, %v422_v62 }
 0x13f   :  { %2966 = vst [vmem:[#allocation25_spill] sm:$0xff] %v2428_v15 }
 0x140   :  { %v665_v35 = vpop.f32.mrf.mxu3  ;;  %v548_v15 = vpop.f32.mrf.mxu2 }
 0x145   :  { %v2434_v19 = vpop.f32.mrf.mxu0  ;;  %v2436_v4 = vpop.f32.mrf.mxu1 }
 0x146   :  { %2969 = vst [vmem:[#allocation28_spill] sm:$0xff] %v2434_v19 }
 0x147   :  { %2970 = vst [vmem:[#allocation29_spill] sm:$0xff] %v2436_v4 }
 0x148   :  { %v2464_v4 = vpop.f32.mrf.mxu3  ;;  %v553_v49 = vpop.f32.mrf.mxu2 }
 0x14d   :  { %v2442_v22 = vpop.f32.mrf.mxu0  ;;  %v2444_v24 = vpop.f32.mrf.mxu1 }
 0x14e   :  { %2972 = vst [vmem:[#allocation31_spill] sm:$0xff] %v2442_v22 }
 0x14f   :  { %2973 = vst [vmem:[#allocation32_spill] sm:$0xff] %v2444_v24 }
 0x150   :  { %v677_v19 = vpop.f32.mrf.mxu3 }
 0x155   :  { %v2448_v11 = vpop.f32.mrf.mxu0  ;;  %v2450_v26 = vpop.f32.mrf.mxu1 }
 0x156   :  { %2974 = vst [vmem:[#allocation33_spill] sm:$0xff] %v2448_v11 }
 0x157   :  { %2975 = vst [vmem:[#allocation34_spill] sm:$0xff] %v2450_v26  ;;  %v666_v26 = vadd.f32 %v665_v35, %v544_v14 }
 0x158   :  { %v683_v32 = vpop.f32.mrf.mxu3 }
 0x15d   :  { %v2454_v33 = vpop.f32.mrf.mxu0  ;;  %v2456_v34 = vpop.f32.mrf.mxu1 }
 0x15e   :  { %2977 = vst [vmem:[#allocation36_spill] sm:$0xff] %v2454_v33 }
 0x15f   :  { %2978 = vst [vmem:[#allocation37_spill] sm:$0xff] %v2456_v34 }
 0x160   :  { %v689_v57 = vpop.f32.mrf.mxu3 }
 0x165   :  { %v2458_v21 = vpop.f32.mrf.mxu0  ;;  %v2460_v47 = vpop.f32.mrf.mxu1 }
 0x166   :  { %2979 = vst [vmem:[#allocation38_spill] sm:$0xff] %v2458_v21  ;;  %v446_v21 = vadd.f32 %v445_v53, %v2395_v6  ;;  %v430_v6 = vadd.f32 %v2371_v37, %v2363_v20  ;;  %v418_v37 = vadd.f32 %v2353_v12, %v2345_v45  ;;  %v394_v45 = vadd.f32 %v2317_v52, %v2309_v42 }
 0x167   :  { %2980 = vst [vmem:[#allocation39_spill] sm:$0xff] %v2460_v47  ;;  %v558_v47 = vpop.f32.mrf.mxu2  ;;  %v410_v12 = vadd.f32 %v2341_v63, %v2333_v2 }
 0x168   :  { %v695_v14 = vpop.f32.mrf.mxu3 }
 0x16d   :  { %v808_v39 = vpop.f32.mrf.mxu0  ;;  %v2466_v24 = vpop.f32.mrf.mxu1 }
 0x16e   :  { %2981 = vst [vmem:[#allocation40_spill] sm:$0xff] %v2466_v24  ;;  %v809_v31 = vadd.f32 %v808_v39, %v666_v26 }
 0x16f   :  { %v563_v18 = vpop.f32.mrf.mxu2 }
 0x170   :  { %v564_v53 = vadd.f32 %v563_v18, %v438_v9 }
 0x172   :  { %v690_v27 = vadd.f32 %v689_v57, %v564_v53 }
 0x175   :  { %v2468_v34 = vpop.f32.mrf.mxu0  ;;  %v905_v22 = vpop.f32.mrf.mxu1 }
 0x176   :  { %v2470_v8 = vadd.f32 %v905_v22, %v809_v31  ;;  %v442_v31 = vadd.f32 %v2397_v7, %v2385_v13  ;;  %v701_v22 = vpop.f32.mrf.mxu3  ;;  %v450_v13 = vadd.f32 %v2411_v61, %v2405_v50 }
 0x177   :  { %v568_v17 = vpop.f32.mrf.mxu2 }
 0x178   :  { %2982 = vst [vmem:[#allocation41_spill] sm:$0xff] %v2470_v8  ;;  %v569_v28 = vadd.f32 %v568_v17, %v442_v31 }
 0x17d   :  { %v816_v11 = vpop.f32.mrf.mxu0  ;;  %v2472_v29 = vpop.f32.mrf.mxu1 }
 0x17e   :  { %2983 = vst [vmem:[#allocation42_spill] sm:$0xff] %v2472_v29  ;;  %v434_v29 = vadd.f32 %v2379_v59, %v2369_v25  ;;  %v504_v25 = vadd.f32 %v2375_v41, %v390_v3  ;;  %v554_v59 = vadd.f32 %v553_v49, %v430_v6  ;;  %v707_v50 = vpop.f32.mrf.mxu3 }
 0x17f   :  { %v573_v26 = vpop.f32.mrf.mxu2 }
 0x180   :  { %v574_v30 = vadd.f32 %v573_v26, %v446_v21  ;;  %v559_v7 = vadd.f32 %v558_v47, %v434_v29  ;;  %v696_v21 = vadd.f32 %v695_v14, %v569_v28  ;;  %v2493_v36 = vadd.f32 %v2381_v55, %v504_v25  ;;  %v2988_v14 = vld [vmem:[#allocation15_spill] sm:$0xff] }
 0x181   :  { %v678_v41 = vadd.f32 %v677_v19, %v554_v59  ;;  %v398_v19 = vadd.f32 %v2323_v54, %v2315_v48  ;;  %v509_v28 = vadd.f32 %v2389_v60, %v394_v45  ;;  %v2985_v54 = vld [vmem:[#allocation26_spill] sm:$0xff]  ;;  %v2993_v25 = vld [vmem:[#allocation27_spill] sm:$0xff] }
 0x182   :  { %v702_v58 = vadd.f32 %v701_v22, %v574_v30  ;;  %v549_v30 = vadd.f32 %v548_v15, %v426_v38  ;;  %v684_v61 = vadd.f32 %v683_v32, %v559_v7  ;;  %v529_v32 = vadd.f32 %v2985_v54, %v410_v12  ;;  %v2990_v22 = vld [vmem:[#allocation30_spill] sm:$0xff]  ;;  %v3004_v54 = vld [vmem:[#allocation28_spill] sm:$0xff] }
 0x183   :  { %v817_v15 = vadd.f32 %v816_v11, %v678_v41  ;;  %v2998_v41 = vld [vmem:[#allocation39_spill] sm:$0xff] }
 0x184   :  { %v672_v55 = vadd.f32 %v2464_v4, %v549_v30  ;;  %v648_v59 = vadd.f32 %v2993_v25, %v529_v32  ;;  %v971_v25 = vld [vmem:[#allocation8] sm:$0xff] }
 0x185   :  { %v820_v33 = vpop.f32.mrf.mxu0  ;;  %v913_v16 = vpop.f32.mrf.mxu1 }
 0x186   :  { %v821_v57 = vadd.f32 %v820_v33, %v684_v61  ;;  %v813_v52 = vadd.f32 %v2468_v34, %v672_v55  ;;  %v914_v63 = vadd.f32 %v913_v16, %v817_v15  ;;  %v2984_v33 = vld [vmem:[#allocation13_spill] sm:$0xff]  ;;  %v2996_v61 = vld [vmem:[#allocation23_spill] sm:$0xff] }
 0x187   :  { %v578_v56 = vpop.f32.mrf.mxu2  ;;  %v402_v48 = vadd.f32 %v2984_v33, %v2321_v46  ;;  %v2991_v46 = vld [vmem:[#allocation38_spill] sm:$0xff]  ;;  %v3000_v55 = vld [vmem:[#allocation19_spill] sm:$0xff]  ;;  %v3003_v33 = vld [vmem:[#allocation16_spill] sm:$0xff] }
 0x188   :  { %v579_v40 = vadd.f32 %v578_v56, %v450_v13  ;;  %v2535_v13 = vand.u32 4294901760, %v914_v63 }
 0x18d   :  { %v824_v24 = vpop.f32.mrf.mxu0  ;;  %v917_v62 = vpop.f32.mrf.mxu1 }
 0x18e   :  { %v825_v9 = vadd.f32 %v824_v24, %v690_v27  ;;  %v918_v3 = vadd.f32 %v917_v62, %v821_v57  ;;  %v406_v24 = vadd.f32 %v2335_v0, %v2327_v51  ;;  %v2986_v51 = vld [vmem:[#allocation35_spill] sm:$0xff] }
 0x190   :  { %v2524_v34 = vand.u32 4294901760, %v918_v3 }
 0x195   :  { %v828_v35 = vpop.f32.mrf.mxu0  ;;  %v921_v39 = vpop.f32.mrf.mxu1 }
 0x196   :  { %v829_v31 = vadd.f32 %v828_v35, %v696_v21  ;;  %v922_v47 = vadd.f32 %v921_v39, %v825_v9  ;;  %v514_v35 = vadd.f32 %v2988_v14, %v398_v19  ;;  %v2989_v39 = vld [vmem:[#allocation20_spill] sm:$0xff]  ;;  %v2992_v21 = vld [vmem:[#allocation17_spill] sm:$0xff] }
 0x197   :  { %v524_v60 = vadd.f32 %v2989_v39, %v406_v24  ;;  %v3002_v19 = vld [vmem:[#allocation37_spill] sm:$0xff] }
 0x199   :  { %v642_v9 = vadd.f32 %v2996_v61, %v524_v60  ;;  %v3006_v60 = vld [vmem:[#allocation14_spill] sm:$0xff] }
 0x19d   :  { %v925_v8 = vpop.f32.mrf.mxu1  ;;  %v832_v44 = vpop.f32.mrf.mxu0 }
 0x19e   :  { %v833_v26 = vadd.f32 %v832_v44, %v702_v58  ;;  %v926_v23 = vadd.f32 %v925_v8, %v829_v31  ;;  %v414_v58 = vadd.f32 %v2347_v1, %v2339_v43  ;;  %v708_v44 = vadd.f32 %v707_v50, %v579_v40  ;;  %v2995_v40 = vld [vmem:[#allocation40_spill] sm:$0xff] }
 0x19f   :  { %v539_v8 = vadd.f32 %v2446_v10, %v418_v37  ;;  %v2513_v10 = vand.u32 4294901760, %v922_v47  ;;  %v2553_v37 = vsub.f32 %v918_v3, %v2524_v34  ;;  %v3001_v3 = vld [vmem:[#allocation31_spill] sm:$0xff] }
 0x1a0   :  { %v2505_v43 = vand.u32 4294901760, %v926_v23  ;;  %v534_v42 = vadd.f32 %v2438_v5, %v414_v58  ;;  %v2987_v5 = vld [vmem:[#allocation42_spill] sm:$0xff] }
 0x1a1   :  { %v660_v0 = vadd.f32 %v2986_v51, %v539_v8  ;;  %v910_v18 = vadd.f32 %v2987_v5, %v813_v52  ;;  %v2538_v38 = vsub.f32 %v922_v47, %v2513_v10  ;;  %v2567_v47 = vsub.f32 %v914_v63, %v2535_v13  ;;  %v3005_v51 = vld [vmem:[#allocation34_spill] sm:$0xff] }
 0x1a2   :  { %v2527_v16 = vsub.f32 %v926_v23, %v2505_v43  ;;  %v654_v6 = vadd.f32 %v2990_v22, %v534_v42  ;;  %v2997_v23 = vld [vmem:[#allocation33_spill] sm:$0xff]  ;;  %v624_v22 = vadd.f32 %v3006_v60, %v509_v28 }
 0x1a3   :  { %v805_v53 = vadd.f32 %v2991_v46, %v660_v0  ;;  %v797_v58 = vadd.f32 %v2997_v23, %v648_v59  ;;  %v1184_v8 = vand.u32 4294901760, %v2538_v38  ;;  %v1196_v39 = vand.u32 4294901760, %v2567_v47 }
 0x1a4   :  { %v1178_v50 = vand.u32 4294901760, %v2527_v16 }
 0x1a5   :  { %v929_v17 = vpop.f32.mrf.mxu1  ;;  %v836_v49 = vpop.f32.mrf.mxu0  ;;  %v902_v31 = vadd.f32 %v2995_v40, %v805_v53  ;;  %v894_v24 = vadd.f32 %v3002_v19, %v797_v58  ;;  %v3008_v53 = vld [vmem:[#allocation32_spill] sm:$0xff]  ;;  %v3009_v40 = vld [vmem:[#allocation21_spill] sm:$0xff] }
 0x1a6   :  { %v930_v20 = vadd.f32 %v929_v17, %v833_v26  ;;  %v837_v1 = vadd.f32 %v836_v49, %v708_v44  ;;  %v519_v26 = vadd.f32 %v2992_v21, %v402_v48  ;;  %v2994_v17 = vld [vmem:[#allocation36_spill] sm:$0xff]  ;;  %v2999_v44 = vld [vmem:[#allocation41_spill] sm:$0xff]  ;;  %v1179_v63 = vsub.f32 %v2527_v16, %v1178_v50 }
 0x1a7   :  { %v801_v27 = vadd.f32 %v2994_v17, %v654_v6  ;;  %v2563_v57 = vand.u32 4294901760, %v2999_v44  ;;  %v2581_v42 = vand.u32 4294901760, %v902_v31  ;;  %v630_v48 = vadd.f32 %v3003_v33, %v514_v35  ;;  %v3007_v6 = vld [vmem:[#allocation24_spill] sm:$0xff]  ;;  %v3013_v33 = vld [vmem:[#allocation22_spill] sm:$0xff] }
 0x1a8   :  { %v2497_v29 = vand.u32 4294901760, %v930_v20  ;;  %v636_v15 = vadd.f32 %v3000_v55, %v519_v26  ;;  %v1185_v35 = vsub.f32 %v2538_v38, %v1184_v8  ;;  %v2611_v26 = vand.u32 4294901760, %v894_v24  ;;  %v3011_v55 = vld [vmem:[#allocation18_spill] sm:$0xff] }
 0x1a9   :  { %v898_v49 = vadd.f32 %v2998_v41, %v801_v27  ;;  %v785_v46 = vadd.f32 %v3007_v6, %v630_v48  ;;  %v2616_v59 = vsub.f32 %v902_v31, %v2581_v42  ;;  %v1180_v17 = vand.u32 4294901760, %v1179_v63 }
 0x1aa   :  { %v2516_v4 = vsub.f32 %v930_v20, %v2497_v29  ;;  %v2550_v20 = vand.u32 4294901760, %v910_v18  ;;  %v789_v32 = vadd.f32 %v3004_v54, %v636_v15  ;;  %v781_v61 = vadd.f32 %v3009_v40, %v624_v22  ;;  %v3012_v15 = vld [vmem:[#allocation25_spill] sm:$0xff] }
 0x1ab   :  { %v2596_v5 = vand.u32 4294901760, %v898_v49  ;;  %v1186_v31 = vand.u32 4294901760, %v1185_v35  ;;  %v2647_v19 = vsub.f32 %v894_v24, %v2611_v26 }
 0x1ac   :  { %v1172_v7 = vand.u32 4294901760, %v2516_v4  ;;  %v2585_v52 = vsub.f32 %v910_v18, %v2550_v20  ;;  %v2601_v18 = vsub.f32 %v2999_v44, %v2563_v57  ;;  %v886_v21 = vadd.f32 %v3008_v53, %v789_v32 }
 0x1ad   :  { %v933_v2 = vpop.f32.mrf.mxu1  ;;  %v2628_v41 = vsub.f32 %v898_v49, %v2596_v5  ;;  %v1197_v44 = vsub.f32 %v2567_v47, %v1196_v39  ;;  %v777_v49 = vadd.f32 %v3011_v55, %v2493_v36  ;;  %v1214_v36 = vand.u32 4294901760, %v2616_v59 }
 0x1ae   :  { %v934_v11 = vadd.f32 %v933_v2, %v837_v1  ;;  %v1173_v12 = vsub.f32 %v2516_v4, %v1172_v7  ;;  %v793_v1 = vadd.f32 %v3001_v3, %v642_v9  ;;  %v1202_v27 = vand.u32 4294901760, %v2585_v52  ;;  %v3010_v9 = vld [vmem:[#allocation29_spill] sm:$0xff] }
 0x1af   :  { %v882_v23 = vadd.f32 %v3010_v9, %v785_v46  ;;  %v878_v3 = vadd.f32 %v3012_v15, %v781_v61  ;;  %v874_v48 = vadd.f32 %v3013_v33, %v777_v49  ;;  %v1198_v24 = vand.u32 4294901760, %v1197_v44 }
 0x1b0   :  { %v2529_v62 = vand.u32 4294901760, %v934_v11  ;;  %v890_v0 = vadd.f32 %v3005_v51, %v793_v1  ;;  %v1174_v14 = vand.u32 4294901760, %v1173_v12  ;;  %v2637_v12 = vand.u32 4294901760, %v971_v25 }
 0x1b1   :  { %v2642_v1 = vand.u32 4294901760, %v886_v21  ;;  %v1203_v63 = vsub.f32 %v2585_v52, %v1202_v27  ;;  %v2655_v54 = vand.u32 4294901760, %v882_v23  ;;  %v2670_v60 = vand.u32 4294901760, %v878_v3 }
 0x1b2   :  { %v2541_v56 = vsub.f32 %v934_v11, %v2529_v62  ;;  %1004 = vmatpush.msrb.mxu2 %v2529_v62  ;;  %1455 = vmatpush.msra.mxu1 %v2529_v62  ;;  %v1190_v11 = vand.u32 4294901760, %v2553_v37  ;;  %v2625_v58 = vand.u32 4294901760, %v890_v0  ;;  %v2668_v35 = vsub.f32 %v971_v25, %v2637_v12 }
 0x1b3   :  { %v2675_v22 = vsub.f32 %v886_v21, %v2642_v1  ;;  %v1204_v6 = vand.u32 4294901760, %v1203_v63  ;;  %v1215_v46 = vsub.f32 %v2616_v59, %v1214_v36  ;;  %v1226_v53 = vand.u32 4294901760, %v2647_v19 }
 0x1b4   :  { %1006 = vmatpush.msrb.mxu2 %v2497_v29  ;;  %1327 = vmatpush.msra.mxu0 %v2541_v56  ;;  %v1166_v30 = vand.u32 4294901760, %v2541_v56  ;;  %v1191_v28 = vsub.f32 %v2553_v37, %v1190_v11  ;;  %v2658_v32 = vsub.f32 %v890_v0, %v2625_v58  ;;  %v972_v0 = vld [vmem:[#allocation8 + $0x8] sm:$0xff]  ;;  %v2682_v25 = vand.u32 4294901760, %v874_v48 }
 0x1b5   :  { %1457 = vmatpush.msra.mxu1 %v2497_v29  ;;  %v1037_v61 = vand.u32 4294901760, %v2668_v35  ;;  %v2695_v9 = vand.u32 4294901760, %v972_v0  ;;  %v1227_v44 = vsub.f32 %v2647_v19, %v1226_v53  ;;  %v2948_v55 = vand.u32 4294901760, %v2675_v22 }
 0x1b6   :  { %1008 = vmatpush.msrb.mxu2 %v2505_v43  ;;  %1330 = vmatpush.msra.mxu0 %v2516_v4  ;;  %v1167_v45 = vsub.f32 %v2541_v56, %v1166_v30  ;;  %v1232_v21 = vand.u32 4294901760, %v2658_v32  ;;  %v2708_v49 = vsub.f32 %v874_v48, %v2682_v25  ;;  %v973_v48 = vld [vmem:[#allocation8 + $0x10] sm:$0xff] }
 0x1b7   :  { %1459 = vmatpush.msra.mxu1 %v2505_v43  ;;  %v1038_v63 = vsub.f32 %v2668_v35, %v1037_v61  ;;  %v1044_v33 = vsub.f32 %v972_v0, %v2695_v9 }
 0x1b8   :  { %1010 = vmatpush.msrb.mxu2 %v2513_v10  ;;  %1333 = vmatpush.msra.mxu0 %v2527_v16  ;;  %v1168_v2 = vand.u32 4294901760, %v1167_v45  ;;  %v1208_v45 = vand.u32 4294901760, %v2601_v18 }
 0x1b9   :  { %1461 = vmatpush.msra.mxu1 %v2513_v10 }
 0x1ba   :  { %1012 = vmatpush.msrb.mxu2 %v2524_v34  ;;  %1169 = vmatpush.msrb.mxu3 %v1168_v2  ;;  %v1192_v2 = vand.u32 4294901760, %v1191_v28  ;;  %v1209_v51 = vsub.f32 %v2601_v18, %v1208_v45 }
 0x1bb   :  { %1336 = vmatpush.msra.mxu0 %v2538_v38  ;;  %1463 = vmatpush.msra.mxu1 %v2524_v34 }
 0x1bc   :  { %1014 = vmatpush.msrb.mxu2 %v2535_v13  ;;  %1175 = vmatpush.msrb.mxu3 %v1174_v14  ;;  %v1220_v14 = vand.u32 4294901760, %v2628_v41  ;;  %v1210_v28 = vand.u32 4294901760, %v1209_v51  ;;  %v1239_v51 = vsub.f32 %v2675_v22, %v2948_v55 }
 0x1bd   :  { %1339 = vmatpush.msra.mxu0 %v2553_v37  ;;  %1465 = vmatpush.msra.mxu1 %v2535_v13 }
 0x1be   :  { %1016 = vmatpush.msrb.mxu2 %v2550_v20  ;;  %1181 = vmatpush.msrb.mxu3 %v1180_v17  ;;  %v2685_v17 = vsub.f32 %v882_v23, %v2655_v54  ;;  %v1221_v40 = vsub.f32 %v2628_v41, %v1220_v14  ;;  %v2700_v23 = vsub.f32 %v878_v3, %v2670_v60 }
 0x1bf   :  { %1342 = vmatpush.msra.mxu0 %v2567_v47  ;;  %1467 = vmatpush.msra.mxu1 %v2550_v20  ;;  %v977_v47 = vld [vmem:[#allocation8 + $0x30] sm:$0xff] }
 0x1c0   :  { %1018 = vmatpush.msrb.mxu2 %v2563_v57  ;;  %1187 = vmatpush.msrb.mxu3 %v1186_v31  ;;  %v1216_v31 = vand.u32 4294901760, %v1215_v46  ;;  %v2947_v15 = vand.u32 4294901760, %v2685_v17  ;;  %v1222_v3 = vand.u32 4294901760, %v1221_v40  ;;  %v2949_v46 = vand.u32 4294901760, %v2708_v49 }
 0x1c1   :  { %1345 = vmatpush.msra.mxu0 %v2585_v52  ;;  %1469 = vmatpush.msra.mxu1 %v2563_v57  ;;  %v1039_v40 = vand.u32 4294901760, %v1038_v63 }
 0x1c2   :  { %1020 = vmatpush.msrb.mxu2 %v2581_v42  ;;  %1193 = vmatpush.msrb.mxu3 %v1192_v2  ;;  %v1233_v2 = vsub.f32 %v2658_v32, %v1232_v21  ;;  %v1245_v0 = vsub.f32 %v2685_v17, %v2947_v15  ;;  %v1257_v63 = vsub.f32 %v2708_v49, %v2949_v46 }
 0x1c3   :  { %1348 = vmatpush.msra.mxu0 %v2601_v18  ;;  %1471 = vmatpush.msra.mxu1 %v2581_v42 }
 0x1c4   :  { %1022 = vmatpush.msrb.mxu2 %v2596_v5  ;;  %1199 = vmatpush.msrb.mxu3 %v1198_v24  ;;  %v1228_v24 = vand.u32 4294901760, %v1227_v44  ;;  %v2733_v44 = vand.u32 4294901760, %v973_v48 }
 0x1c5   :  { %1351 = vmatpush.msra.mxu0 %v2616_v59  ;;  %1473 = vmatpush.msra.mxu1 %v2596_v5 }
 0x1c6   :  { %1024 = vmatpush.msrb.mxu2 %v2611_v26  ;;  %1205 = vmatpush.msrb.mxu3 %v1204_v6  ;;  %v1250_v6 = vand.u32 4294901760, %v2700_v23  ;;  %v1052_v55 = vsub.f32 %v973_v48, %v2733_v44 }
 0x1c7   :  { %1354 = vmatpush.msra.mxu0 %v2628_v41  ;;  %1475 = vmatpush.msra.mxu1 %v2611_v26 }
 0x1c8   :  { %1026 = vmatpush.msrb.mxu2 %v2625_v58  ;;  %1211 = vmatpush.msrb.mxu3 %v1210_v28  ;;  %v1234_v28 = vand.u32 4294901760, %v1233_v2  ;;  %v1251_v15 = vsub.f32 %v2700_v23, %v1250_v6  ;;  %v1246_v2 = vand.u32 4294901760, %v1245_v0  ;;  %v1258_v0 = vand.u32 4294901760, %v1257_v63  ;;  %v983_v63 = vld [vmem:[#allocation8 + $0x60] sm:$0xff] }
 0x1c9   :  { %1357 = vmatpush.msra.mxu0 %v2647_v19  ;;  %1477 = vmatpush.msra.mxu1 %v2625_v58 }
 0x1ca   :  { %1028 = vmatpush.msrb.mxu2 %v2642_v1  ;;  %1217 = vmatpush.msrb.mxu3 %v1216_v31  ;;  %v1045_v31 = vand.u32 4294901760, %v1044_v33 }
 0x1cb   :  { %1360 = vmatpush.msra.mxu0 %v2658_v32  ;;  %1479 = vmatpush.msra.mxu1 %v2642_v1 }
 0x1cc   :  { %1030 = vmatpush.msrb.mxu2 %v2655_v54  ;;  %1223 = vmatpush.msrb.mxu3 %v1222_v3  ;;  %v1240_v3 = vand.u32 4294901760, %v1239_v51  ;;  %v974_v51 = vld [vmem:[#allocation8 + $0x18] sm:$0xff] }
 0x1cd   :  { %1363 = vmatpush.msra.mxu0 %v2675_v22  ;;  %1481 = vmatpush.msra.mxu1 %v2655_v54  ;;  %v2753_v46 = vand.u32 4294901760, %v974_v51 }
 0x1ce   :  { %1032 = vmatpush.msrb.mxu2 %v2670_v60  ;;  %1229 = vmatpush.msrb.mxu3 %v1228_v24  ;;  %v1046_v24 = vsub.f32 %v1044_v33, %v1045_v31 }
 0x1cf   :  { %1366 = vmatpush.msra.mxu0 %v2685_v17  ;;  %1483 = vmatpush.msra.mxu1 %v2670_v60  ;;  %v1060_v56 = vsub.f32 %v974_v51, %v2753_v46 }
 0x1d0   :  { %1034 = vmatpush.msrb.mxu2 %v2682_v25  ;;  %1235 = vmatpush.msrb.mxu3 %v1234_v28  ;;  %v1252_v28 = vand.u32 4294901760, %v1251_v15  ;;  %v982_v15 = vld [vmem:[#allocation8 + $0x58] sm:$0xff] }
 0x1d1   :  { %1369 = vmatpush.msra.mxu0 %v2700_v23  ;;  %1485 = vmatpush.msra.mxu1 %v2682_v25  ;;  %v1061_v38 = vand.u32 4294901760, %v1060_v56 }
 0x1d2   :  { %1040 = vmatmul.f32.vlgmr.msrb.gmra.mxu2 %v1039_v40  ;;  %1241 = vmatpush.msrb.mxu3 %v1240_v3  ;;  %v1047_v40 = vand.u32 4294901760, %v1046_v24  ;;  %v1053_v3 = vand.u32 4294901760, %v1052_v55 }
 0x1d3   :  { %1586 = vmatpush.msra.mxu2 %v1166_v30  ;;  %1372 = vmatpush.msra.mxu0 %v2708_v49 }
 0x1d4   :  { %1247 = vmatpush.msrb.mxu3 %v1246_v2  ;;  %1375 = vmatmul.f32.vlgmr.msra.gmra.mxu0 %v2668_v35  ;;  %v1054_v4 = vsub.f32 %v1052_v55, %v1053_v3 }
 0x1d5   :  { %1590 = vmatpush.msra.mxu2 %v1172_v7  ;;  %1489 = vmatmul.f32.vlgmr.msra.gmra.mxu1 %v1037_v61  ;;  %v975_v7 = vld [vmem:[#allocation8 + $0x20] sm:$0xff] }
 0x1d6   :  { %1253 = vmatpush.msrb.mxu3 %v1252_v28  ;;  %v1055_v16 = vand.u32 4294901760, %v1054_v4  ;;  %v2768_v30 = vand.u32 4294901760, %v975_v7  ;;  %v2833_v28 = vand.u32 4294901760, %v983_v63 }
 0x1d7   :  { %1594 = vmatpush.msra.mxu2 %v1178_v50 }
 0x1d8   :  { %1259 = vmatpush.msrb.mxu3 %v1258_v0 }
 0x1d9   :  { %1598 = vmatpush.msra.mxu2 %v1184_v8  ;;  %1261 = vmatmul.f32.vlgmr.msrb.gmra.mxu3 %v2637_v12 }
 0x1da   :  { %1048 = vmatmul.f32.gmra.mxu2 %v1047_v40  ;;  %1713 = vmatpush.msra.mxu3 %v2529_v62  ;;  %v976_v62 = vld [vmem:[#allocation8 + $0x28] sm:$0xff]  ;;  %v1132_v40 = vsub.f32 %v983_v63, %v2833_v28 }
 0x1db   :  { %1602 = vmatpush.msra.mxu2 %v1190_v11  ;;  %v2784_v50 = vand.u32 4294901760, %v976_v62  ;;  %v2800_v11 = vand.u32 4294901760, %v977_v47 }
 0x1dc   :  { %1715 = vmatpush.msra.mxu3 %v2497_v29  ;;  %1380 = vmatmul.f32.gmra.mxu0 %v1044_v33  ;;  %v1062_v29 = vsub.f32 %v1060_v56, %v1061_v38 }
 0x1dd   :  { %1606 = vmatpush.msra.mxu2 %v1196_v39  ;;  %1495 = vmatmul.f32.gmra.mxu1 %v1045_v31  ;;  %v1084_v18 = vsub.f32 %v977_v47, %v2800_v11  ;;  %v978_v39 = vld [vmem:[#allocation8 + $0x38] sm:$0xff] }
 0x1de   :  { %1717 = vmatpush.msra.mxu3 %v2505_v43  ;;  %v1068_v43 = vsub.f32 %v975_v7, %v2768_v30 }
 0x1df   :  { %1610 = vmatpush.msra.mxu2 %v1202_v27  ;;  %v1085_v59 = vand.u32 4294901760, %v1084_v18  ;;  %v2812_v27 = vand.u32 4294901760, %v978_v39 }
 0x1e0   :  { %1719 = vmatpush.msra.mxu3 %v2513_v10  ;;  %v1063_v10 = vand.u32 4294901760, %v1062_v29  ;;  %v1069_v37 = vand.u32 4294901760, %v1068_v43  ;;  %v985_v29 = vld [vmem:[#allocation8 + $0x70] sm:$0xff] }
 0x1e1   :  { %1614 = vmatpush.msra.mxu2 %v1208_v45  ;;  %1265 = vmatmul.f32.gmra.mxu3 %v2695_v9  ;;  %v1092_v41 = vsub.f32 %v978_v39, %v2812_v27  ;;  %v979_v45 = vld [vmem:[#allocation8 + $0x40] sm:$0xff] }
 0x1e2   :  { %1056 = vmatmul.f32.gmra.mxu2 %v1055_v16  ;;  %1721 = vmatpush.msra.mxu3 %v2524_v34  ;;  %v1070_v34 = vsub.f32 %v1068_v43, %v1069_v37 }
 0x1e3   :  { %1618 = vmatpush.msra.mxu2 %v1214_v36  ;;  %v1093_v19 = vand.u32 4294901760, %v1092_v41  ;;  %v2817_v36 = vand.u32 4294901760, %v979_v45 }
 0x1e4   :  { %1723 = vmatpush.msra.mxu3 %v2535_v13  ;;  %1385 = vmatmul.f32.gmra.mxu0 %v1052_v55  ;;  %v1076_v13 = vsub.f32 %v976_v62, %v2784_v50  ;;  %v1071_v8 = vand.u32 4294901760, %v1070_v34 }
 0x1e5   :  { %1622 = vmatpush.msra.mxu2 %v1220_v14  ;;  %1501 = vmatmul.f32.gmra.mxu1 %v1053_v3  ;;  %v1100_v32 = vsub.f32 %v979_v45, %v2817_v36  ;;  %v980_v14 = vld [vmem:[#allocation8 + $0x48] sm:$0xff] }
 0x1e6   :  { %1725 = vmatpush.msra.mxu3 %v2550_v20  ;;  %v3014_v20 = vand.u32 4294901760, %v2675_v22  ;;  %v1077_v52 = vand.u32 4294901760, %v1076_v13  ;;  %v2821_v22 = vand.u32 4294901760, %v980_v14  ;;  %v984_v3 = vld [vmem:[#allocation8 + $0x68] sm:$0xff] }
 0x1e7   :  { %1626 = vmatpush.msra.mxu2 %v1226_v53  ;;  %v2837_v7 = vand.u32 4294901760, %v984_v3 }
 0x1e8   :  { %1727 = vmatpush.msra.mxu3 %v2563_v57  ;;  %v3015_v57 = vand.u32 4294901760, %v2685_v17  ;;  %v981_v17 = vld [vmem:[#allocation8 + $0x50] sm:$0xff] }
 0x1e9   :  { %1630 = vmatpush.msra.mxu2 %v1232_v21  ;;  %1269 = vmatmul.f32.gmra.mxu3 %v2733_v44  ;;  %v2825_v23 = vand.u32 4294901760, %v981_v17 }
 0x1ea   :  { %1064 = vmatmul.f32.gmra.mxu2 %v1063_v10  ;;  %1729 = vmatpush.msra.mxu3 %v2581_v42  ;;  %v3016_v42 = vand.u32 4294901760, %v2708_v49  ;;  %v2841_v10 = vand.u32 4294901760, %v985_v29 }
 0x1eb   :  { %1634 = vmatpush.msra.mxu2 %v3014_v20  ;;  %v1116_v49 = vsub.f32 %v981_v17, %v2825_v23 }
 0x1ec   :  { %1731 = vmatpush.msra.mxu3 %v2596_v5  ;;  %1390 = vmatmul.f32.gmra.mxu0 %v1060_v56  ;;  %v1078_v5 = vsub.f32 %v1076_v13, %v1077_v52  ;;  %v1133_v56 = vand.u32 4294901760, %v1132_v40  ;;  %v1148_v34 = vsub.f32 %v985_v29, %v2841_v10 }
 0x1ed   :  { %1638 = vmatpush.msra.mxu2 %v3015_v57  ;;  %1507 = vmatmul.f32.gmra.mxu1 %v1061_v38  ;;  %v1117_v48 = vand.u32 4294901760, %v1116_v49  ;;  %v1140_v38 = vsub.f32 %v984_v3, %v2837_v7 }
 0x1ee   :  { %1733 = vmatpush.msra.mxu3 %v2611_v26  ;;  %v1079_v26 = vand.u32 4294901760, %v1078_v5  ;;  %v1134_v16 = vsub.f32 %v1132_v40, %v1133_v56  ;;  %v1149_v47 = vand.u32 4294901760, %v1148_v34 }
 0x1ef   :  { %1642 = vmatpush.msra.mxu2 %v1250_v6  ;;  %v2829_v6 = vand.u32 4294901760, %v982_v15  ;;  %v1118_v31 = vsub.f32 %v1116_v49, %v1117_v48  ;;  %v1141_v62 = vand.u32 4294901760, %v1140_v38 }
 0x1f0   :  { %1735 = vmatpush.msra.mxu3 %v2625_v58  ;;  %v1086_v58 = vsub.f32 %v1084_v18, %v1085_v59 }
 0x1f1   :  { %1646 = vmatpush.msra.mxu2 %v3016_v42  ;;  %1273 = vmatmul.f32.gmra.mxu3 %v2753_v46  ;;  %v1124_v2 = vsub.f32 %v982_v15, %v2829_v6  ;;  %v1119_v24 = vand.u32 4294901760, %v1118_v31 }
 0x1f2   :  { %1072 = vmatmul.f32.gmra.mxu2 %v1071_v8  ;;  %1737 = vmatpush.msra.mxu3 %v2642_v1  ;;  %v1087_v1 = vand.u32 4294901760, %v1086_v58  ;;  %v1150_v8 = vsub.f32 %v1148_v34, %v1149_v47 }
 0x1f3   :  { %v1125_v51 = vand.u32 4294901760, %v1124_v2 }
 0x1f4   :  { %1739 = vmatpush.msra.mxu3 %v2655_v54  ;;  %1395 = vmatmul.f32.gmra.mxu0 %v1068_v43  ;;  %v1094_v54 = vsub.f32 %v1092_v41, %v1093_v19  ;;  %v1135_v43 = vand.u32 4294901760, %v1134_v16  ;;  %v1151_v42 = vand.u32 4294901760, %v1150_v8 }
 0x1f5   :  { %1513 = vmatmul.f32.gmra.mxu1 %v1069_v37  ;;  %v1126_v0 = vsub.f32 %v1124_v2, %v1125_v51  ;;  %v1142_v37 = vsub.f32 %v1140_v38, %v1141_v62 }
 0x1f6   :  { %1741 = vmatpush.msra.mxu3 %v2670_v60  ;;  %v1095_v35 = vand.u32 4294901760, %v1094_v54  ;;  %v1101_v60 = vand.u32 4294901760, %v1100_v32 }
 0x1f7   :  { %v1127_v4 = vand.u32 4294901760, %v1126_v0  ;;  %v1143_v20 = vand.u32 4294901760, %v1142_v37 }
 0x1f8   :  { %1743 = vmatpush.msra.mxu3 %v2682_v25  ;;  %v1102_v53 = vsub.f32 %v1100_v32, %v1101_v60  ;;  %v1108_v25 = vsub.f32 %v980_v14, %v2821_v22 }
 0x1f9   :  { %1277 = vmatmul.f32.gmra.mxu3 %v2768_v30 }
 0x1fa   :  { %1080 = vmatmul.f32.gmra.mxu2 %v1079_v26  ;;  %v1103_v21 = vand.u32 4294901760, %v1102_v53  ;;  %v1109_v61 = vand.u32 4294901760, %v1108_v25 }
 0x1fc   :  { %1400 = vmatmul.f32.gmra.mxu0 %v1076_v13  ;;  %v1110_v55 = vsub.f32 %v1108_v25, %v1109_v61  ;;  %v986_v13 = vld [vmem:[#allocation8 + $0x78] sm:$0xff] }
 0x1fd   :  { %1519 = vmatmul.f32.gmra.mxu1 %v1077_v52  ;;  %v2845_v57 = vand.u32 4294901760, %v986_v13 }
 0x1fe   :  { %v1111_v33 = vand.u32 4294901760, %v1110_v55 }
 0x1ff   :  { %v1156_v52 = vsub.f32 %v986_v13, %v2845_v57 }
 0x201   :  { %1281 = vmatmul.f32.gmra.mxu3 %v2784_v50  ;;  %v1157_v5 = vand.u32 4294901760, %v1156_v52 }
 0x202   :  { %1088 = vmatmul.f32.gmra.mxu2 %v1087_v1 }
 0x204   :  { %1405 = vmatmul.f32.gmra.mxu0 %v1084_v18  ;;  %v1158_v18 = vsub.f32 %v1156_v52, %v1157_v5 }
 0x205   :  { %1525 = vmatmul.f32.gmra.mxu1 %v1085_v59 }
 0x206   :  { %v1159_v39 = vand.u32 4294901760, %v1158_v18 }
 0x209   :  { %1285 = vmatmul.f32.gmra.mxu3 %v2800_v11 }
 0x20a   :  { %1096 = vmatmul.f32.gmra.mxu2 %v1095_v35 }
 0x20c   :  { %1410 = vmatmul.f32.gmra.mxu0 %v1092_v41 }
 0x20d   :  { %1531 = vmatmul.f32.gmra.mxu1 %v1093_v19 }
 0x211   :  { %1289 = vmatmul.f32.gmra.mxu3 %v2812_v27 }
 0x212   :  { %1104 = vmatmul.f32.gmra.mxu2 %v1103_v21 }
 0x214   :  { %1415 = vmatmul.f32.gmra.mxu0 %v1100_v32 }
 0x215   :  { %1537 = vmatmul.f32.gmra.mxu1 %v1101_v60 }
 0x219   :  { %1293 = vmatmul.f32.gmra.mxu3 %v2817_v36 }
 0x21a   :  { %1112 = vmatmul.f32.gmra.mxu2 %v1111_v33 }
 0x21c   :  { %1420 = vmatmul.f32.gmra.mxu0 %v1108_v25 }
 0x21d   :  { %1543 = vmatmul.f32.gmra.mxu1 %v1109_v61 }
 0x221   :  { %1297 = vmatmul.f32.gmra.mxu3 %v2821_v22 }
 0x222   :  { %1120 = vmatmul.f32.gmra.mxu2 %v1119_v24 }
 0x224   :  { %1425 = vmatmul.f32.gmra.mxu0 %v1116_v49 }
 0x225   :  { %1549 = vmatmul.f32.gmra.mxu1 %v1117_v48 }
 0x229   :  { %1301 = vmatmul.f32.gmra.mxu3 %v2825_v23 }
 0x22a   :  { %1128 = vmatmul.f32.gmra.mxu2 %v1127_v4 }
 0x22c   :  { %1430 = vmatmul.f32.gmra.mxu0 %v1124_v2 }
 0x22d   :  { %1555 = vmatmul.f32.gmra.mxu1 %v1125_v51 }
 0x231   :  { %1305 = vmatmul.f32.gmra.mxu3 %v2829_v6 }
 0x232   :  { %1136 = vmatmul.f32.gmra.mxu2 %v1135_v43 }
 0x234   :  { %1435 = vmatmul.f32.gmra.mxu0 %v1132_v40 }
 0x235   :  { %1561 = vmatmul.f32.gmra.mxu1 %v1133_v56 }
 0x239   :  { %1309 = vmatmul.f32.gmra.mxu3 %v2833_v28 }
 0x23a   :  { %1144 = vmatmul.f32.gmra.mxu2 %v1143_v20 }
 0x23c   :  { %1440 = vmatmul.f32.gmra.mxu0 %v1140_v38 }
 0x23d   :  { %1567 = vmatmul.f32.gmra.mxu1 %v1141_v62 }
 0x241   :  { %1313 = vmatmul.f32.gmra.mxu3 %v2837_v7 }
 0x242   :  { %1152 = vmatmul.f32.gmra.mxu2 %v1151_v42 }
 0x244   :  { %1445 = vmatmul.f32.gmra.mxu0 %v1148_v34 }
 0x245   :  { %1573 = vmatmul.f32.gmra.mxu1 %v1149_v47 }
 0x249   :  { %1317 = vmatmul.f32.gmra.mxu3 %v2841_v10 }
 0x24a   :  { %1160 = vmatmul.f32.gmra.mxu2 %v1159_v39 }
 0x24c   :  { %1450 = vmatmul.f32.gmra.mxu0 %v1156_v52 }
 0x24d   :  { %1579 = vmatmul.f32.gmra.mxu1 %v1157_v5 }
 0x251   :  { %1321 = vmatmul.f32.gmra.mxu3 %v2845_v57 }
 0x252   :  { %1648 = vmatmul.f32.vlgmr.msra.gmra.mxu2 %v2637_v12  ;;  %v1490_v40 = vpop.f32.mrf.mxu1 }
 0x255   :  { %v1041_v26 = vpop.f32.mrf.mxu2 }
 0x259   :  { %1745 = vmatmul.f32.vlgmr.msra.gmra.mxu3 %v2637_v12 }
 0x25a   :  { %1652 = vmatmul.f32.gmra.mxu2 %v2695_v9 }
 0x25c   :  { %v1262_v59 = vpop.f32.mrf.mxu3 }
 0x25d   :  { %v1049_v58 = vpop.f32.mrf.mxu2  ;;  %v2855_v41 = vadd.f32 %v1262_v59, %v1041_v26 }
 0x261   :  { %1749 = vmatmul.f32.gmra.mxu3 %v2695_v9 }
 0x262   :  { %1656 = vmatmul.f32.gmra.mxu2 %v2733_v44 }
 0x264   :  { %v1266_v45 = vpop.f32.mrf.mxu3 }
 0x265   :  { %v1057_v1 = vpop.f32.mrf.mxu2  ;;  %v2859_v19 = vadd.f32 %v1266_v45, %v1049_v58 }
 0x269   :  { %1753 = vmatmul.f32.gmra.mxu3 %v2733_v44 }
 0x26a   :  { %1660 = vmatmul.f32.gmra.mxu2 %v2753_v46 }
 0x26c   :  { %v1270_v54 = vpop.f32.mrf.mxu3 }
 0x26d   :  { %v1065_v12 = vpop.f32.mrf.mxu2  ;;  %v2863_v32 = vadd.f32 %v1270_v54, %v1057_v1 }
 0x271   :  { %1757 = vmatmul.f32.gmra.mxu3 %v2753_v46 }
 0x272   :  { %1664 = vmatmul.f32.gmra.mxu2 %v2768_v30 }
 0x274   :  { %v1274_v14 = vpop.f32.mrf.mxu3 }
 0x275   :  { %v1073_v9 = vpop.f32.mrf.mxu2  ;;  %v2867_v35 = vadd.f32 %v1274_v14, %v1065_v12 }
 0x279   :  { %1761 = vmatmul.f32.gmra.mxu3 %v2768_v30 }
 0x27a   :  { %1668 = vmatmul.f32.gmra.mxu2 %v2784_v50 }
 0x27c   :  { %v1278_v60 = vpop.f32.mrf.mxu3 }
 0x27d   :  { %v1081_v44 = vpop.f32.mrf.mxu2  ;;  %v2871_v53 = vadd.f32 %v1278_v60, %v1073_v9 }
 0x281   :  { %1765 = vmatmul.f32.gmra.mxu3 %v2784_v50 }
 0x282   :  { %1672 = vmatmul.f32.gmra.mxu2 %v2800_v11 }
 0x284   :  { %v1282_v25 = vpop.f32.mrf.mxu3 }
 0x285   :  { %v1089_v46 = vpop.f32.mrf.mxu2  ;;  %v2875_v17 = vadd.f32 %v1282_v25, %v1081_v44 }
 0x289   :  { %1769 = vmatmul.f32.gmra.mxu3 %v2800_v11 }
 0x28a   :  { %1676 = vmatmul.f32.gmra.mxu2 %v2812_v27 }
 0x28c   :  { %v1286_v21 = vpop.f32.mrf.mxu3 }
 0x28d   :  { %v1097_v30 = vpop.f32.mrf.mxu2  ;;  %v2879_v61 = vadd.f32 %v1286_v21, %v1089_v46 }
 0x291   :  { %1773 = vmatmul.f32.gmra.mxu3 %v2812_v27 }
 0x292   :  { %1680 = vmatmul.f32.gmra.mxu2 %v2817_v36 }
 0x294   :  { %v1290_v55 = vpop.f32.mrf.mxu3 }
 0x295   :  { %v1105_v50 = vpop.f32.mrf.mxu2  ;;  %v2883_v49 = vadd.f32 %v1290_v55, %v1097_v30 }
 0x299   :  { %1777 = vmatmul.f32.gmra.mxu3 %v2817_v36 }
 0x29a   :  { %1684 = vmatmul.f32.gmra.mxu2 %v2821_v22 }
 0x29c   :  { %v1294_v15 = vpop.f32.mrf.mxu3 }
 0x29d   :  { %v1113_v11 = vpop.f32.mrf.mxu2  ;;  %v2887_v33 = vadd.f32 %v1294_v15, %v1105_v50 }
 0x2a1   :  { %1781 = vmatmul.f32.gmra.mxu3 %v2821_v22  ;;  %v1376_v22 = vpop.f32.mrf.mxu0 }
 0x2a2   :  { %1688 = vmatmul.f32.gmra.mxu2 %v2825_v23  ;;  %v1377_v20 = vadd.f32 %v1376_v22, %v2855_v41 }
 0x2a4   :  { %v1298_v48 = vpop.f32.mrf.mxu3  ;;  %v1491_v42 = vadd.f32 %v1490_v40, %v1377_v20 }
 0x2a5   :  { %v1121_v27 = vpop.f32.mrf.mxu2  ;;  %v2891_v31 = vadd.f32 %v1298_v48, %v1113_v11 }
 0x2a9   :  { %1785 = vmatmul.f32.gmra.mxu3 %v2825_v23  ;;  %v1381_v56 = vpop.f32.mrf.mxu0 }
 0x2aa   :  { %1692 = vmatmul.f32.gmra.mxu2 %v2829_v6  ;;  %v1382_v39 = vadd.f32 %v1381_v56, %v2859_v19 }
 0x2ac   :  { %v1302_v2 = vpop.f32.mrf.mxu3 }
 0x2ad   :  { %v1129_v36 = vpop.f32.mrf.mxu2  ;;  %v2895_v63 = vadd.f32 %v1302_v2, %v1121_v27 }
 0x2b1   :  { %1789 = vmatmul.f32.gmra.mxu3 %v2829_v6  ;;  %v1496_v6 = vpop.f32.mrf.mxu1  ;;  %v1386_v43 = vpop.f32.mrf.mxu0 }
 0x2b2   :  { %1696 = vmatmul.f32.gmra.mxu2 %v2833_v28  ;;  %v1497_v45 = vadd.f32 %v1496_v6, %v1382_v39  ;;  %v1387_v54 = vadd.f32 %v1386_v43, %v2863_v32 }
 0x2b4   :  { %v1306_v24 = vpop.f32.mrf.mxu3 }
 0x2b5   :  { %v1137_v51 = vpop.f32.mrf.mxu2  ;;  %v2899_v0 = vadd.f32 %v1306_v24, %v1129_v36 }
 0x2b9   :  { %1793 = vmatmul.f32.gmra.mxu3 %v2833_v28  ;;  %v1502_v62 = vpop.f32.mrf.mxu1 }
 0x2ba   :  { %1700 = vmatmul.f32.gmra.mxu2 %v2837_v7  ;;  %v1503_v9 = vadd.f32 %v1502_v62, %v1387_v54 }
 0x2bc   :  { %v1310_v23 = vpop.f32.mrf.mxu3 }
 0x2bd   :  { %v1145_v3 = vpop.f32.mrf.mxu2  ;;  %v2903_v4 = vadd.f32 %v1310_v23, %v1137_v51 }
 0x2c1   :  { %1797 = vmatmul.f32.gmra.mxu3 %v2837_v7  ;;  %v1391_v7 = vpop.f32.mrf.mxu0  ;;  %v1508_v52 = vpop.f32.mrf.mxu1 }
 0x2c2   :  { %1704 = vmatmul.f32.gmra.mxu2 %v2841_v10  ;;  %v1392_v46 = vadd.f32 %v1391_v7, %v2867_v35 }
 0x2c4   :  { %v1314_v16 = vpop.f32.mrf.mxu3  ;;  %v1509_v55 = vadd.f32 %v1508_v52, %v1392_v46 }
 0x2c5   :  { %v1153_v38 = vpop.f32.mrf.mxu2  ;;  %v2907_v29 = vadd.f32 %v1314_v16, %v1145_v3 }
 0x2c9   :  { %1801 = vmatmul.f32.gmra.mxu3 %v2841_v10  ;;  %v1396_v18 = vpop.f32.mrf.mxu0  ;;  %v1514_v58 = vpop.f32.mrf.mxu1 }
 0x2ca   :  { %1708 = vmatmul.f32.gmra.mxu2 %v2845_v57  ;;  %v1397_v32 = vadd.f32 %v1396_v18, %v2871_v53 }
 0x2cc   :  { %v1318_v28 = vpop.f32.mrf.mxu3  ;;  %v1515_v2 = vadd.f32 %v1514_v58, %v1397_v32 }
 0x2cd   :  { %v1161_v37 = vpop.f32.mrf.mxu2  ;;  %v2911_v34 = vadd.f32 %v1318_v28, %v1153_v38 }
 0x2d1   :  { %1805 = vmatmul.f32.gmra.mxu3 %v2845_v57  ;;  %v1401_v14 = vpop.f32.mrf.mxu0  ;;  %v1520_v60 = vpop.f32.mrf.mxu1 }
 0x2d2   :  { %v1402_v51 = vadd.f32 %v1401_v14, %v2875_v17 }
 0x2d4   :  { %v1322_v13 = vpop.f32.mrf.mxu3  ;;  %v1521_v3 = vadd.f32 %v1520_v60, %v1402_v51 }
 0x2d5   :  { %v2915_v47 = vadd.f32 %v1322_v13, %v1161_v37  ;;  %v1649_v8 = vpop.f32.mrf.mxu2 }
 0x2d6   :  { %v1650_v5 = vadd.f32 %v1649_v8, %v1491_v42 }
 0x2d9   :  { %v1406_v30 = vpop.f32.mrf.mxu0  ;;  %v1526_v15 = vpop.f32.mrf.mxu1 }
 0x2da   :  { %v1407_v38 = vadd.f32 %v1406_v30, %v2879_v61 }
 0x2dc   :  { %v1746_v10 = vpop.f32.mrf.mxu3  ;;  %v1527_v62 = vadd.f32 %v1526_v15, %v1407_v38 }
 0x2dd   :  { %v1653_v26 = vpop.f32.mrf.mxu2  ;;  %v1747_v59 = vadd.f32 %v1746_v10, %v1650_v5 }
 0x2de   :  { %v1654_v57 = vadd.f32 %v1653_v26, %v1497_v45 }
 0x2df   :  { %1809 = vst [vmem:[#allocation9] sm:$0xff] %v1747_v59 }
 0x2e1   :  { %v1411_v36 = vpop.f32.mrf.mxu0  ;;  %v1532_v23 = vpop.f32.mrf.mxu1 }
 0x2e2   :  { %v1412_v13 = vadd.f32 %v1411_v36, %v2883_v49 }
 0x2e4   :  { %v1750_v1 = vpop.f32.mrf.mxu3  ;;  %v1533_v52 = vadd.f32 %v1532_v23, %v1412_v13 }
 0x2e5   :  { %v1657_v41 = vpop.f32.mrf.mxu2  ;;  %v1751_v12 = vadd.f32 %v1750_v1, %v1654_v57 }
 0x2e6   :  { %v1658_v44 = vadd.f32 %v1657_v41, %v1503_v9 }
 0x2e7   :  { %1810 = vst [vmem:[#allocation9 + $0x8] sm:$0xff] %v1751_v12 }
 0x2e9   :  { %v1416_v6 = vpop.f32.mrf.mxu0  ;;  %v1538_v28 = vpop.f32.mrf.mxu1 }
 0x2ea   :  { %v1417_v18 = vadd.f32 %v1416_v6, %v2887_v33 }
 0x2ec   :  { %v1754_v25 = vpop.f32.mrf.mxu3  ;;  %v1539_v59 = vadd.f32 %v1538_v28, %v1417_v18 }
 0x2ed   :  { %v1661_v19 = vpop.f32.mrf.mxu2  ;;  %v1755_v21 = vadd.f32 %v1754_v25, %v1658_v44 }
 0x2ee   :  { %v1662_v50 = vadd.f32 %v1661_v19, %v1509_v55 }
 0x2ef   :  { %1811 = vst [vmem:[#allocation9 + $0x10] sm:$0xff] %v1755_v21 }
 0x2f1   :  { %v1421_v8 = vpop.f32.mrf.mxu0  ;;  %v1544_v42 = vpop.f32.mrf.mxu1 }
 0x2f2   :  { %v1422_v49 = vadd.f32 %v1421_v8, %v2891_v31 }
 0x2f4   :  { %v1758_v11 = vpop.f32.mrf.mxu3  ;;  %v1545_v41 = vadd.f32 %v1544_v42, %v1422_v49 }
 0x2f5   :  { %v1665_v48 = vpop.f32.mrf.mxu2  ;;  %v1759_v27 = vadd.f32 %v1758_v11, %v1662_v50 }
 0x2f6   :  { %v1666_v24 = vadd.f32 %v1665_v48, %v1515_v2 }
 0x2f7   :  { %1812 = vst [vmem:[#allocation9 + $0x18] sm:$0xff] %v1759_v27 }
 0x2f9   :  { %v1426_v26 = vpop.f32.mrf.mxu0  ;;  %v1550_v45 = vpop.f32.mrf.mxu1 }
 0x2fa   :  { %v1427_v60 = vadd.f32 %v1426_v26, %v2895_v63 }
 0x2fc   :  { %v1762_v22 = vpop.f32.mrf.mxu3  ;;  %v1551_v46 = vadd.f32 %v1550_v45, %v1427_v60 }
 0x2fd   :  { %v1669_v35 = vpop.f32.mrf.mxu2  ;;  %v1763_v40 = vadd.f32 %v1762_v22, %v1666_v24 }
 0x2fe   :  { %v1670_v56 = vadd.f32 %v1669_v35, %v1521_v3 }
 0x2ff   :  { %1813 = vst [vmem:[#allocation9 + $0x20] sm:$0xff] %v1763_v40 }
 0x301   :  { %v1431_v12 = vpop.f32.mrf.mxu0  ;;  %v1556_v25 = vpop.f32.mrf.mxu1 }
 0x302   :  { %v1432_v55 = vadd.f32 %v1431_v12, %v2899_v0 }
 0x304   :  { %v1766_v16 = vpop.f32.mrf.mxu3  ;;  %v1557_v11 = vadd.f32 %v1556_v25, %v1432_v55 }
 0x305   :  { %v1673_v53 = vpop.f32.mrf.mxu2  ;;  %v1767_v43 = vadd.f32 %v1766_v16, %v1670_v56 }
 0x306   :  { %v1674_v37 = vadd.f32 %v1673_v53, %v1527_v62 }
 0x307   :  { %1814 = vst [vmem:[#allocation9 + $0x28] sm:$0xff] %v1767_v43 }
 0x309   :  { %v1436_v21 = vpop.f32.mrf.mxu0  ;;  %v1562_v15 = vpop.f32.mrf.mxu1 }
 0x30a   :  { %v1437_v27 = vadd.f32 %v1436_v21, %v2903_v4 }
 0x30c   :  { %v1770_v7 = vpop.f32.mrf.mxu3  ;;  %v1563_v24 = vadd.f32 %v1562_v15, %v1437_v27 }
 0x30d   :  { %v1677_v17 = vpop.f32.mrf.mxu2  ;;  %v1771_v20 = vadd.f32 %v1770_v7, %v1674_v37 }
 0x30e   :  { %v1678_v5 = vadd.f32 %v1677_v17, %v1533_v52 }
 0x30f   :  { %1815 = vst [vmem:[#allocation9 + $0x30] sm:$0xff] %v1771_v20 }
 0x311   :  { %v1441_v36 = vpop.f32.mrf.mxu0  ;;  %v1568_v22 = vpop.f32.mrf.mxu1 }
 0x312   :  { %v1442_v40 = vadd.f32 %v1441_v36, %v2907_v29 }
 0x314   :  { %v1774_v10 = vpop.f32.mrf.mxu3  ;;  %v1569_v56 = vadd.f32 %v1568_v22, %v1442_v40 }
 0x315   :  { %v1681_v61 = vpop.f32.mrf.mxu2  ;;  %v1775_v39 = vadd.f32 %v1774_v10, %v1678_v5 }
 0x316   :  { %v1682_v58 = vadd.f32 %v1681_v61, %v1539_v59 }
 0x317   :  { %1816 = vst [vmem:[#allocation9 + $0x38] sm:$0xff] %v1775_v39 }
 0x319   :  { %v1446_v3 = vpop.f32.mrf.mxu0  ;;  %v1574_v16 = vpop.f32.mrf.mxu1 }
 0x31a   :  { %v1447_v4 = vadd.f32 %v1446_v3, %v2911_v34 }
 0x31c   :  { %v1778_v57 = vpop.f32.mrf.mxu3  ;;  %v1575_v28 = vadd.f32 %v1574_v16, %v1447_v4 }
 0x31d   :  { %v1685_v1 = vpop.f32.mrf.mxu2  ;;  %v1779_v54 = vadd.f32 %v1778_v57, %v1682_v58 }
 0x31e   :  { %v1686_v14 = vadd.f32 %v1685_v1, %v1545_v41 }
 0x31f   :  { %1817 = vst [vmem:[#allocation9 + $0x40] sm:$0xff] %v1779_v54 }
 0x321   :  { %v1451_v62 = vpop.f32.mrf.mxu0  ;;  %v1580_v17 = vpop.f32.mrf.mxu1 }
 0x322   :  { %v1452_v13 = vadd.f32 %v1451_v62, %v2915_v47 }
 0x324   :  { %v1782_v9 = vpop.f32.mrf.mxu3  ;;  %v1581_v8 = vadd.f32 %v1580_v17, %v1452_v13 }
 0x325   :  { %v1689_v33 = vpop.f32.mrf.mxu2  ;;  %v1783_v44 = vadd.f32 %v1782_v9, %v1686_v14 }
 0x326   :  { %v1690_v19 = vadd.f32 %v1689_v33, %v1551_v46 }
 0x327   :  { %1818 = vst [vmem:[#allocation9 + $0x48] sm:$0xff] %v1783_v44 }
 0x32c   :  { %v1786_v30 = vpop.f32.mrf.mxu3 }
 0x32d   :  { %v1693_v31 = vpop.f32.mrf.mxu2  ;;  %v1787_v50 = vadd.f32 %v1786_v30, %v1690_v19 }
 0x32e   :  { %v1694_v32 = vadd.f32 %v1693_v31, %v1557_v11 }
 0x32f   :  { %1819 = vst [vmem:[#allocation9 + $0x50] sm:$0xff] %v1787_v50 }
 0x334   :  { %v1790_v48 = vpop.f32.mrf.mxu3 }
 0x335   :  { %v1697_v63 = vpop.f32.mrf.mxu2  ;;  %v1791_v2 = vadd.f32 %v1790_v48, %v1694_v32 }
 0x336   :  { %v1698_v51 = vadd.f32 %v1697_v63, %v1563_v24 }
 0x337   :  { %1820 = vst [vmem:[#allocation9 + $0x58] sm:$0xff] %v1791_v2 }
 0x33c   :  { %v1794_v35 = vpop.f32.mrf.mxu3 }
 0x33d   :  { %v1701_v0 = vpop.f32.mrf.mxu2  ;;  %v1795_v23 = vadd.f32 %v1794_v35, %v1698_v51 }
 0x33e   :  { %v1702_v6 = vadd.f32 %v1701_v0, %v1569_v56 }
 0x33f   :  { %1821 = vst [vmem:[#allocation9 + $0x60] sm:$0xff] %v1795_v23 }
 0x344   :  { %v1798_v38 = vpop.f32.mrf.mxu3 }
 0x345   :  { %v1799_v53 = vadd.f32 %v1798_v38, %v1702_v6  ;;  %v1705_v43 = vpop.f32.mrf.mxu2 }
 0x346   :  { %v1706_v37 = vadd.f32 %v1705_v43, %v1575_v28 }
 0x347   :  { %1822 = vst [vmem:[#allocation9 + $0x68] sm:$0xff] %v1799_v53 }
 0x34c   :  { %v1802_v7 = vpop.f32.mrf.mxu3 }
 0x34d   :  { %v1803_v29 = vadd.f32 %v1802_v7, %v1706_v37  ;;  %v1709_v20 = vpop.f32.mrf.mxu2 }
 0x34e   :  { %v1710_v34 = vadd.f32 %v1709_v20, %v1581_v8 }
 0x34f   :  { %1823 = vst [vmem:[#allocation9 + $0x70] sm:$0xff] %v1803_v29 }
 0x354   :  { %v1806_v52 = vpop.f32.mrf.mxu3 }
 0x355   :  { %v1807_v42 = vadd.f32 %v1806_v52, %v1710_v34 }
 0x357   :  { %1824 = vst [vmem:[#allocation9 + $0x78] sm:$0xff] %v1807_v42 }
 0x358   :  { %1837 = dma.vmem_to_hbm [thread:$0]  %s1830_s27, 2048, %s1832_s30, [#allocation5], %s1954_s20, %s1954_s20, %s1955_s21  }
 0x359   :  { %1951 = dma.done.wait [#allocation5], 2048  }
 0x35a   :  { %1952 = vsyncadd [#allocation5], 4294965248 }
 0x35b   :  { %1842 = vsyncpa [#allocation4], 1 }
 0x35c   :  { %1843 = vsyncpa [#allocation7], 1 }
 0x35d   :  { %1844 = vsyncpa [#allocation5], 1 }

</bundles_post_ra>
